<compile_context>
chip_gen: v7x
topology: tpu7x:2x2x1
jax: 0.10.0
libtpu: 0.0.40
codegen_flags: <defaults>
</compile_context>

<pallas_src>
import math
import functools

import jax
import jax.numpy as jnp
from jax.experimental import pallas as pl
from jax.experimental.pallas import tpu as pltpu


def _attention_kernel(x_ref, w1_ref, b1_ref, w2_ref, o_ref, *,
                      batch: int, seq_len: int, channels: int,
                      heads_per_group: int, head_dim: int):
    """One head-group, whole batch, fused proj1 -> SDPA -> partial proj2.

    x_ref:  (B, L, C)               input tokens (same block for every step)
    w1_ref: (1, C, 3*Hb*hd)         this group's permuted proj1 weight (x @ w)
    b1_ref: (1, 1, 3*Hb*hd)         this group's permuted proj1 bias (f32)
    w2_ref: (1, Hb*hd, C)           this group's permuted proj2 weight rows
    o_ref:  (1, B, L, C)            this group's partial proj2 output (f32)
    """
    B, L, C = batch, seq_len, channels
    Hb, hd = heads_per_group, head_dim
    cg = Hb * hd
    mdt = w1_ref.dtype  # MXU operand dtype (f32 or bf16); accumulation is f32.

    # proj1 for this group's q/k/v columns: (B*L, C) @ (C, 3*cg), M = B*L.
    x = x_ref[...].reshape(B * L, C).astype(mdt)
    qkv = jnp.dot(x, w1_ref[0], preferred_element_type=jnp.float32) + b1_ref[0]
    qkv_m = qkv.astype(mdt)  # matmul-operand copy; softmax stats stay f32

    scale = 1.0 / math.sqrt(hd)
    per_b = []
    for b in range(B):
        r0 = b * L
        head_outs = []
        for h in range(Hb):
            # Static lane slices of the group's [q | k | v] slab (head-contig).
            q = qkv_m[r0:r0 + L, 0 * cg + h * hd: 0 * cg + (h + 1) * hd]
            k = qkv_m[r0:r0 + L, 1 * cg + h * hd: 1 * cg + (h + 1) * hd]
            v = qkv_m[r0:r0 + L, 2 * cg + h * hd: 2 * cg + (h + 1) * hd]

            # q @ k^T via dot_general (contract last dims), f32 accumulation.
            s = jax.lax.dot_general(
                q, k, (((1,), (1,)), ((), ())),
                preferred_element_type=jnp.float32) * scale          # (L, L) f32
            m = jnp.max(s, axis=-1, keepdims=True)
            p = jnp.exp(s - m)
            p = p * pl.reciprocal(jnp.sum(p, axis=-1, keepdims=True), approx=True)
            head_outs.append(
                jnp.dot(p.astype(mdt), v, preferred_element_type=jnp.float32))

        hcat = head_outs[0] if Hb == 1 else jnp.concatenate(head_outs, axis=1)
        per_b.append(hcat)                                           # (L, cg) f32

    attn = per_b[0] if B == 1 else jnp.concatenate(per_b, axis=0)    # (B*L, cg)

    # Partial proj2 for this head group: (B*L, cg) @ (cg, C), M = B*L.
    part = jnp.dot(attn.astype(mdt), w2_ref[0], preferred_element_type=jnp.float32)
    o_ref[0] = part.reshape(B, L, C).astype(o_ref.dtype)


def prepare_params(w1, b1, w2, b2, num_heads: int,
                   num_head_groups: int | None = None,
                   mxu_dtype=jnp.bfloat16):
    """One-time parameter preprocessing (hoisted out of the forward path).

    Folds the einops channel interleavings of proj1/proj2 into weight
    permutations and splits the heads into `num_head_groups` contiguous slabs
    (one grid step each).  w1/w2 are cast to `mxu_dtype`; biases stay f32.

    w1: (3C, C), b1: (3C,), w2: (C, C), b2: (C,)  [nn.Linear layout]
    """
    three_c, c = w1.shape
    assert three_c == 3 * c and c % num_heads == 0
    hd = c // num_heads
    if num_head_groups is None:
        num_head_groups = 2 if (num_heads % 2 == 0 and num_heads >= 2) else 1
    g = num_head_groups
    assert num_heads % g == 0
    hb = num_heads // g

    # proj1: PyTorch output feature j = c_hd*(H*3) + h*3 + k (c_hd slowest,
    # k fastest).  Kernel wants, per head-group, columns ordered
    # k*(hb*hd) + h_in_group*hd + c_hd  ([q|k|v], head-contiguous).
    w1g = (jnp.transpose(w1)                       # (C_in, 3C_out)
           .reshape(c, hd, num_heads, 3)           # (C_in, c_hd, h, k)
           .transpose(2, 0, 3, 1)                  # (h, C_in, k, c_hd)
           .reshape(g, hb, c, 3, hd)
           .transpose(0, 2, 3, 1, 4)               # (g, C_in, k, h_in_g, c_hd)
           .reshape(g, c, 3 * hb * hd))
    b1g = (b1.reshape(hd, num_heads, 3)            # (c_hd, h, k)
           .transpose(1, 2, 0)                     # (h, k, c_hd)
           .reshape(g, hb, 3, hd)
           .transpose(0, 2, 1, 3)                  # (g, k, h_in_g, c_hd)
           .reshape(g, 1, 3 * hb * hd))

    # proj2: PyTorch input feature j = c_hd*H + h; kernel feeds, per group,
    # rows ordered h_in_group*hd + c_hd.
    w2g = (jnp.transpose(w2)                       # (C_in, C_out)
           .reshape(hd, num_heads, c)              # (c_hd, h, C_out)
           .transpose(1, 0, 2)                     # (h, c_hd, C_out)
           .reshape(g, hb * hd, c))

    return (w1g.astype(mxu_dtype),
            b1g.astype(jnp.float32),
            w2g.astype(mxu_dtype),
            b2.astype(jnp.float32))


def attention_forward(x_nchw, params, num_heads: int):
    """x_nchw: (B, C, H, W); params from prepare_params()."""
    w1g, b1g, w2g, b2 = params
    B, C, H, W = x_nchw.shape
    L = H * W
    G = w1g.shape[0]
    Hb = num_heads // G
    hd = C // num_heads
    cg = Hb * hd

    # Glue: NCHW -> (B, L, C).
    x_blc = jnp.transpose(x_nchw, (0, 2, 3, 1)).reshape(B, L, C)

    kernel = functools.partial(_attention_kernel, batch=B, seq_len=L,
                               channels=C, heads_per_group=Hb, head_dim=hd)

    # Grid over head groups only; batch is folded into every step.  x and the
    # group-indexed weights are small and (with constant / per-step block
    # indices) are not re-DMA'd redundantly.  "parallel" lets v7x's two
    # TensorCores take one head group each.
    partials = pl.pallas_call(
        kernel,
        out_shape=jax.ShapeDtypeStruct((G, B, L, C), jnp.float32),
        grid_spec=pltpu.PrefetchScalarGridSpec(
            num_scalar_prefetch=0,
            grid=(G,),
            in_specs=[
                pl.BlockSpec((B, L, C), lambda g: (0, 0, 0)),
                pl.BlockSpec((1, C, 3 * cg), lambda g: (g, 0, 0)),
                pl.BlockSpec((1, 1, 3 * cg), lambda g: (g, 0, 0)),
                pl.BlockSpec((1, cg, C), lambda g: (g, 0, 0)),
            ],
            out_specs=pl.BlockSpec((1, B, L, C), lambda g: (g, 0, 0, 0)),
        ),
        compiler_params=pltpu.CompilerParams(
            dimension_semantics=("parallel",)),
    )(x_blc, w1g, b1g, w2g)

    # Combine the per-group partial proj2 contributions, add bias.
    out_blc = (jnp.sum(partials, axis=0) + b2).astype(x_nchw.dtype)

    # Glue: (B, L, C) -> NCHW.
    return jnp.transpose(out_blc.reshape(B, H, W, C), (0, 3, 1, 2))


def attention_reference(x_nchw, w1, b1, w2, b2, num_heads: int):
    """Pure-JAX mirror of the PyTorch forward (for correctness check)."""
    B, C, H, W = x_nchw.shape
    L = H * W
    hd = C // num_heads
    xr = jnp.transpose(x_nchw, (0, 2, 3, 1)).reshape(B, L, C)
    y = xr @ w1.T + b1                                   # (B, L, 3C)
    y = y.reshape(B, L, hd, num_heads, 3)                # b L (Ch H K)
    y = jnp.transpose(y, (4, 0, 3, 1, 2))                # K b H L Ch
    q, k, v = y[0], y[1], y[2]
    s = jnp.einsum('bhqc,bhkc->bhqk', q, k) / math.sqrt(hd)
    p = jax.nn.softmax(s, axis=-1)
    o = jnp.einsum('bhqk,bhkc->bhqc', p, v)              # b H L Ch
    o = jnp.transpose(o, (0, 2, 3, 1)).reshape(B, L, C)  # b L (Ch H)
    o = o @ w2.T + b2
    return jnp.transpose(o.reshape(B, H, W, C), (0, 3, 1, 2))


if __name__ == "__main__":
    B, C, H, W = 2, 32, 8, 8
    num_heads = 4
    dropout_prob = 0.0  # see TODO(synk) at top

    key = jax.random.PRNGKey(0)
    kx, k1, k2, k3, k4 = jax.random.split(key, 5)

    x = jax.random.normal(kx, (B, C, H, W), dtype=jnp.float32)
    # Deterministic synthetic parameters (nn.Linear shapes).
    bound1 = 1.0 / math.sqrt(C)
    w1 = jax.random.uniform(k1, (3 * C, C), minval=-bound1, maxval=bound1, dtype=jnp.float32)
    b1 = jax.random.uniform(k2, (3 * C,), minval=-bound1, maxval=bound1, dtype=jnp.float32)
    w2 = jax.random.uniform(k3, (C, C), minval=-bound1, maxval=bound1, dtype=jnp.float32)
    b2 = jax.random.uniform(k4, (C,), minval=-bound1, maxval=bound1, dtype=jnp.float32)

    ref = attention_reference(x, w1, b1, w2, b2, num_heads)
    fwd = jax.jit(attention_forward, static_argnums=(2,))

    # f32 MXU-operand path (tight-ish check; approx reciprocal loosens it).
    params_f32 = prepare_params(w1, b1, w2, b2, num_heads, mxu_dtype=jnp.float32)
    out_f32 = jax.block_until_ready(fwd(x, params_f32, num_heads))
    assert out_f32.shape == (B, C, H, W), out_f32.shape
    if not jnp.allclose(out_f32, ref, atol=1e-2, rtol=1e-2):
        raise AssertionError("Pallas kernel (f32 path) mismatch vs JAX reference")

    # bf16 MXU-operand path (default fast path; f32 softmax stats / accum).
    params_bf16 = prepare_params(w1, b1, w2, b2, num_heads, mxu_dtype=jnp.bfloat16)
    out_bf16 = jax.block_until_ready(fwd(x, params_bf16, num_heads))
    assert out_bf16.shape == (B, C, H, W), out_bf16.shape
    if not jnp.allclose(out_bf16, ref, atol=1e-1, rtol=1e-1):
        raise AssertionError("Pallas kernel (bf16 path) mismatch vs JAX reference")

    print("KERNEL_OK")
</pallas_src>

<mosaic_0001>
module attributes {stable_mosaic.version = 11 : i64} {
  func.func @_attention_kernel(%arg0: i32, %arg1: memref<2x64x32xf32, #tpu.memory_space<vmem>>, %arg2: memref<1x32x48xf32, #tpu.memory_space<vmem>>, %arg3: memref<1x1x48xf32, #tpu.memory_space<vmem>>, %arg4: memref<1x16x32xf32, #tpu.memory_space<vmem>>, %arg5: memref<1x2x64x32xf32, #tpu.memory_space<vmem>>) attributes {dimension_semantics = [#tpu.dimension_semantics<parallel>], iteration_bounds = array<i64: 2>, scalar_prefetch = 0 : i64, scratch_operands = 0 : i64, tpu.core_type = #tpu.core_type<tc>, window_params = [{pipeline_mode = #tpu.pipeline_mode<synchronous>, transform_indices = @transform_0, window_bounds = array<i64: 2, 64, 32>}, {transform_indices = @transform_1, window_bounds = array<i64: 1, 32, 48>}, {transform_indices = @transform_2, window_bounds = array<i64: 1, 1, 48>}, {transform_indices = @transform_3, window_bounds = array<i64: 1, 16, 32>}, {transform_indices = @transform_4, window_bounds = array<i64: 1, 2, 64, 32>}]} {
    %c0 = arith.constant 0 : index
    %c0_0 = arith.constant 0 : index
    %c0_1 = arith.constant 0 : index
    %0 = vector.load %arg1[%c0, %c0_0, %c0_1] : memref<2x64x32xf32, #tpu.memory_space<vmem>>, vector<2x64x32xf32>
    %1 = vector.shape_cast %0 : vector<2x64x32xf32> to vector<128x32xf32>
    %c0_2 = arith.constant 0 : index
    %c0_3 = arith.constant 0 : index
    %c0_4 = arith.constant 0 : index
    %2 = vector.load %arg2[%c0_2, %c0_3, %c0_4] : memref<1x32x48xf32, #tpu.memory_space<vmem>>, vector<1x32x48xf32>
    %3 = vector.shape_cast %2 : vector<1x32x48xf32> to vector<32x48xf32>
    %cst = arith.constant dense<0.000000e+00> : vector<128x48xf32>
    %4 = tpu.matmul %1, %3, %cst {dimension_numbers = #tpu.dot_dimension_numbers<[1], [0], [0], [1], [0, 0, 1, 1], [], []>} : vector<128x32xf32>, vector<32x48xf32>, vector<128x48xf32> -> vector<128x48xf32>
    %c0_5 = arith.constant 0 : index
    %c0_6 = arith.constant 0 : index
    %c0_7 = arith.constant 0 : index
    %5 = vector.load %arg3[%c0_5, %c0_6, %c0_7] : memref<1x1x48xf32, #tpu.memory_space<vmem>>, vector<1x1x48xf32>
    %6 = vector.shape_cast %5 : vector<1x1x48xf32> to vector<1x48xf32>
    %7 = vector.broadcast %6 : vector<1x48xf32> to vector<128x48xf32>
    %8 = arith.addf %4, %7 : vector<128x48xf32>
    %9 = vector.extract_strided_slice %8 {offsets = [0, 0], sizes = [64, 8], strides = [1, 1]} : vector<128x48xf32> to vector<64x8xf32>
    %10 = vector.extract_strided_slice %8 {offsets = [0, 16], sizes = [64, 8], strides = [1, 1]} : vector<128x48xf32> to vector<64x8xf32>
    %11 = vector.extract_strided_slice %8 {offsets = [0, 32], sizes = [64, 8], strides = [1, 1]} : vector<128x48xf32> to vector<64x8xf32>
    %cst_8 = arith.constant dense<0.000000e+00> : vector<64x64xf32>
    %12 = tpu.matmul %9, %10, %cst_8 {dimension_numbers = #tpu.dot_dimension_numbers<[1], [1], [0], [0], [0, 0, 1, 0], [], []>} : vector<64x8xf32>, vector<64x8xf32>, vector<64x64xf32> -> vector<64x64xf32>
    %cst_9 = arith.constant 0.353553385 : f32
    %13 = vector.broadcast %cst_9 : f32 to vector<64x64xf32>
    %14 = arith.mulf %12, %13 : vector<64x64xf32>
    %cst_10 = arith.constant dense<0xFF800000> : vector<64xf32>
    %15 = vector.multi_reduction <maximumf>, %14, %cst_10 [1] : vector<64x64xf32> to vector<64xf32>
    %16 = vector.shape_cast %15 : vector<64xf32> to vector<64x1xf32>
    %17 = vector.broadcast %16 : vector<64x1xf32> to vector<64x64xf32>
    %18 = arith.subf %14, %17 : vector<64x64xf32>
    %19 = math.exp %18 : vector<64x64xf32>
    %cst_11 = arith.constant dense<0.000000e+00> : vector<64xf32>
    %20 = vector.multi_reduction <add>, %19, %cst_11 [1] : vector<64x64xf32> to vector<64xf32>
    %21 = vector.shape_cast %20 : vector<64xf32> to vector<64x1xf32>
    %22 = tpu.reciprocal %21 {approx = true} : vector<64x1xf32> -> vector<64x1xf32>
    %23 = vector.broadcast %22 : vector<64x1xf32> to vector<64x64xf32>
    %24 = arith.mulf %19, %23 : vector<64x64xf32>
    %cst_12 = arith.constant dense<0.000000e+00> : vector<64x8xf32>
    %25 = tpu.matmul %24, %11, %cst_12 {dimension_numbers = #tpu.dot_dimension_numbers<[1], [0], [0], [1], [0, 0, 1, 1], [], []>} : vector<64x64xf32>, vector<64x8xf32>, vector<64x8xf32> -> vector<64x8xf32>
    %26 = vector.extract_strided_slice %8 {offsets = [0, 8], sizes = [64, 8], strides = [1, 1]} : vector<128x48xf32> to vector<64x8xf32>
    %27 = vector.extract_strided_slice %8 {offsets = [0, 24], sizes = [64, 8], strides = [1, 1]} : vector<128x48xf32> to vector<64x8xf32>
    %28 = vector.extract_strided_slice %8 {offsets = [0, 40], sizes = [64, 8], strides = [1, 1]} : vector<128x48xf32> to vector<64x8xf32>
    %cst_13 = arith.constant dense<0.000000e+00> : vector<64x64xf32>
    %29 = tpu.matmul %26, %27, %cst_13 {dimension_numbers = #tpu.dot_dimension_numbers<[1], [1], [0], [0], [0, 0, 1, 0], [], []>} : vector<64x8xf32>, vector<64x8xf32>, vector<64x64xf32> -> vector<64x64xf32>
    %cst_14 = arith.constant 0.353553385 : f32
    %30 = vector.broadcast %cst_14 : f32 to vector<64x64xf32>
    %31 = arith.mulf %29, %30 : vector<64x64xf32>
    %cst_15 = arith.constant dense<0xFF800000> : vector<64xf32>
    %32 = vector.multi_reduction <maximumf>, %31, %cst_15 [1] : vector<64x64xf32> to vector<64xf32>
    %33 = vector.shape_cast %32 : vector<64xf32> to vector<64x1xf32>
    %34 = vector.broadcast %33 : vector<64x1xf32> to vector<64x64xf32>
    %35 = arith.subf %31, %34 : vector<64x64xf32>
    %36 = math.exp %35 : vector<64x64xf32>
    %cst_16 = arith.constant dense<0.000000e+00> : vector<64xf32>
    %37 = vector.multi_reduction <add>, %36, %cst_16 [1] : vector<64x64xf32> to vector<64xf32>
    %38 = vector.shape_cast %37 : vector<64xf32> to vector<64x1xf32>
    %39 = tpu.reciprocal %38 {approx = true} : vector<64x1xf32> -> vector<64x1xf32>
    %40 = vector.broadcast %39 : vector<64x1xf32> to vector<64x64xf32>
    %41 = arith.mulf %36, %40 : vector<64x64xf32>
    %cst_17 = arith.constant dense<0.000000e+00> : vector<64x8xf32>
    %42 = tpu.matmul %41, %28, %cst_17 {dimension_numbers = #tpu.dot_dimension_numbers<[1], [0], [0], [1], [0, 0, 1, 1], [], []>} : vector<64x64xf32>, vector<64x8xf32>, vector<64x8xf32> -> vector<64x8xf32>
    %43 = tpu.concatenate %25, %42 in 1 : vector<64x8xf32>, vector<64x8xf32> -> vector<64x16xf32>
    %44 = vector.extract_strided_slice %8 {offsets = [64, 0], sizes = [64, 8], strides = [1, 1]} : vector<128x48xf32> to vector<64x8xf32>
    %45 = vector.extract_strided_slice %8 {offsets = [64, 16], sizes = [64, 8], strides = [1, 1]} : vector<128x48xf32> to vector<64x8xf32>
    %46 = vector.extract_strided_slice %8 {offsets = [64, 32], sizes = [64, 8], strides = [1, 1]} : vector<128x48xf32> to vector<64x8xf32>
    %cst_18 = arith.constant dense<0.000000e+00> : vector<64x64xf32>
    %47 = tpu.matmul %44, %45, %cst_18 {dimension_numbers = #tpu.dot_dimension_numbers<[1], [1], [0], [0], [0, 0, 1, 0], [], []>} : vector<64x8xf32>, vector<64x8xf32>, vector<64x64xf32> -> vector<64x64xf32>
    %cst_19 = arith.constant 0.353553385 : f32
    %48 = vector.broadcast %cst_19 : f32 to vector<64x64xf32>
    %49 = arith.mulf %47, %48 : vector<64x64xf32>
    %cst_20 = arith.constant dense<0xFF800000> : vector<64xf32>
    %50 = vector.multi_reduction <maximumf>, %49, %cst_20 [1] : vector<64x64xf32> to vector<64xf32>
    %51 = vector.shape_cast %50 : vector<64xf32> to vector<64x1xf32>
    %52 = vector.broadcast %51 : vector<64x1xf32> to vector<64x64xf32>
    %53 = arith.subf %49, %52 : vector<64x64xf32>
    %54 = math.exp %53 : vector<64x64xf32>
    %cst_21 = arith.constant dense<0.000000e+00> : vector<64xf32>
    %55 = vector.multi_reduction <add>, %54, %cst_21 [1] : vector<64x64xf32> to vector<64xf32>
    %56 = vector.shape_cast %55 : vector<64xf32> to vector<64x1xf32>
    %57 = tpu.reciprocal %56 {approx = true} : vector<64x1xf32> -> vector<64x1xf32>
    %58 = vector.broadcast %57 : vector<64x1xf32> to vector<64x64xf32>
    %59 = arith.mulf %54, %58 : vector<64x64xf32>
    %cst_22 = arith.constant dense<0.000000e+00> : vector<64x8xf32>
    %60 = tpu.matmul %59, %46, %cst_22 {dimension_numbers = #tpu.dot_dimension_numbers<[1], [0], [0], [1], [0, 0, 1, 1], [], []>} : vector<64x64xf32>, vector<64x8xf32>, vector<64x8xf32> -> vector<64x8xf32>
    %61 = vector.extract_strided_slice %8 {offsets = [64, 8], sizes = [64, 8], strides = [1, 1]} : vector<128x48xf32> to vector<64x8xf32>
    %62 = vector.extract_strided_slice %8 {offsets = [64, 24], sizes = [64, 8], strides = [1, 1]} : vector<128x48xf32> to vector<64x8xf32>
    %63 = vector.extract_strided_slice %8 {offsets = [64, 40], sizes = [64, 8], strides = [1, 1]} : vector<128x48xf32> to vector<64x8xf32>
    %cst_23 = arith.constant dense<0.000000e+00> : vector<64x64xf32>
    %64 = tpu.matmul %61, %62, %cst_23 {dimension_numbers = #tpu.dot_dimension_numbers<[1], [1], [0], [0], [0, 0, 1, 0], [], []>} : vector<64x8xf32>, vector<64x8xf32>, vector<64x64xf32> -> vector<64x64xf32>
    %cst_24 = arith.constant 0.353553385 : f32
    %65 = vector.broadcast %cst_24 : f32 to vector<64x64xf32>
    %66 = arith.mulf %64, %65 : vector<64x64xf32>
    %cst_25 = arith.constant dense<0xFF800000> : vector<64xf32>
    %67 = vector.multi_reduction <maximumf>, %66, %cst_25 [1] : vector<64x64xf32> to vector<64xf32>
    %68 = vector.shape_cast %67 : vector<64xf32> to vector<64x1xf32>
    %69 = vector.broadcast %68 : vector<64x1xf32> to vector<64x64xf32>
    %70 = arith.subf %66, %69 : vector<64x64xf32>
    %71 = math.exp %70 : vector<64x64xf32>
    %cst_26 = arith.constant dense<0.000000e+00> : vector<64xf32>
    %72 = vector.multi_reduction <add>, %71, %cst_26 [1] : vector<64x64xf32> to vector<64xf32>
    %73 = vector.shape_cast %72 : vector<64xf32> to vector<64x1xf32>
    %74 = tpu.reciprocal %73 {approx = true} : vector<64x1xf32> -> vector<64x1xf32>
    %75 = vector.broadcast %74 : vector<64x1xf32> to vector<64x64xf32>
    %76 = arith.mulf %71, %75 : vector<64x64xf32>
    %cst_27 = arith.constant dense<0.000000e+00> : vector<64x8xf32>
    %77 = tpu.matmul %76, %63, %cst_27 {dimension_numbers = #tpu.dot_dimension_numbers<[1], [0], [0], [1], [0, 0, 1, 1], [], []>} : vector<64x64xf32>, vector<64x8xf32>, vector<64x8xf32> -> vector<64x8xf32>
    %78 = tpu.concatenate %60, %77 in 1 : vector<64x8xf32>, vector<64x8xf32> -> vector<64x16xf32>
    %79 = tpu.concatenate %43, %78 in 0 : vector<64x16xf32>, vector<64x16xf32> -> vector<128x16xf32>
    %c0_28 = arith.constant 0 : index
    %c0_29 = arith.constant 0 : index
    %c0_30 = arith.constant 0 : index
    %80 = vector.load %arg4[%c0_28, %c0_29, %c0_30] : memref<1x16x32xf32, #tpu.memory_space<vmem>>, vector<1x16x32xf32>
    %81 = vector.shape_cast %80 : vector<1x16x32xf32> to vector<16x32xf32>
    %cst_31 = arith.constant dense<0.000000e+00> : vector<128x32xf32>
    %82 = tpu.matmul %79, %81, %cst_31 {dimension_numbers = #tpu.dot_dimension_numbers<[1], [0], [0], [1], [0, 0, 1, 1], [], []>} : vector<128x16xf32>, vector<16x32xf32>, vector<128x32xf32> -> vector<128x32xf32>
    %83 = vector.shape_cast %82 : vector<128x32xf32> to vector<2x64x32xf32>
    %c0_32 = arith.constant 0 : index
    %c0_33 = arith.constant 0 : index
    %c0_34 = arith.constant 0 : index
    %c0_35 = arith.constant 0 : index
    %84 = vector.load %arg5[%c0_32, %c0_33, %c0_34, %c0_35] : memref<1x2x64x32xf32, #tpu.memory_space<vmem>>, vector<1x2x64x32xf32>
    %85 = vector.shape_cast %84 : vector<1x2x64x32xf32> to vector<2x64x32xf32>
    %86 = vector.shape_cast %83 : vector<2x64x32xf32> to vector<1x2x64x32xf32>
    tpu.vector_store %arg5[%c0_32, %c0_33, %c0_34, %c0_35], %86 {strides = array<i32>} : memref<1x2x64x32xf32, #tpu.memory_space<vmem>>, vector<1x2x64x32xf32>,
    return
  }
  func.func @transform_0(%arg0: i32) -> (i32, i32, i32) {
    %c0_i32 = arith.constant 0 : i32
    %c0_i32_0 = arith.constant 0 : i32
    %c0_i32_1 = arith.constant 0 : i32
    %c0_i32_2 = arith.constant 0 : i32
    return %c0_i32, %c0_i32_0, %c0_i32_1 : i32, i32, i32
  }
  func.func @transform_1(%arg0: i32) -> (i32, i32, i32) {
    %c0_i32 = arith.constant 0 : i32
    %c0_i32_0 = arith.constant 0 : i32
    %c0_i32_1 = arith.constant 0 : i32
    return %arg0, %c0_i32, %c0_i32_0 : i32, i32, i32
  }
  func.func @transform_2(%arg0: i32) -> (i32, i32, i32) {
    %c0_i32 = arith.constant 0 : i32
    %c0_i32_0 = arith.constant 0 : i32
    %c0_i32_1 = arith.constant 0 : i32
    return %arg0, %c0_i32, %c0_i32_0 : i32, i32, i32
  }
  func.func @transform_3(%arg0: i32) -> (i32, i32, i32) {
    %c0_i32 = arith.constant 0 : i32
    %c0_i32_0 = arith.constant 0 : i32
    %c0_i32_1 = arith.constant 0 : i32
    return %arg0, %c0_i32, %c0_i32_0 : i32, i32, i32
  }
  func.func @transform_4(%arg0: i32) -> (i32, i32, i32, i32) {
    %c0_i32 = arith.constant 0 : i32
    %c0_i32_0 = arith.constant 0 : i32
    %c0_i32_1 = arith.constant 0 : i32
    %c0_i32_2 = arith.constant 0 : i32
    return %arg0, %c0_i32, %c0_i32_0, %c0_i32_1 : i32, i32, i32, i32
  }
}

</mosaic_0001>

<bundles_post_ra>
// kernel: attention_forward.1
= control target key start
LH: loop header
LB: loop body
LE: loop exit
PB: predicated region body
PF: predicated region fallthrough
CT: control target
= control target key end

     0   :  { %9 = vsyncpa [#allocation3], 0  ;;  %s4854_s0 = inlined_call_operand.hbm [shape: f32[2,64,32], index: 0, kind: input, shape index: {}]   ;;  %s4855_s1 = inlined_call_operand.hbm [shape: f32[2,32,48], index: 1, kind: input, shape index: {}]   ;;  %s4856_s2 = inlined_call_operand.vmem [shape: f32[2,1,48], index: 2, kind: input, shape index: {}]   ;;  %s4857_s3 = inlined_call_operand.hbm [shape: f32[2,16,32], index: 3, kind: input, shape index: {}]   ;;  %s4858_s4 = inlined_call_operand.vmem [shape: f32[2,2,64,32], index: 4, kind: output, shape index: {}]  }
   0x1   :  { %10 = vsyncpa [#allocation5], 0 }
   0x2   :  { %12 = vsyncpa [#allocation5 + $0x1], 0  ;;  %s3850_s15 = smov 0   ;;  %s3852_s16 = smov 0  }
   0x3   :  { %s3854_s17 = smov 0   ;;  %s3856_s18 = smov 0  }
   0x4 LB: > { %s3871_s19 = sadd.s32 1, %s3812_s18   ;;  %s46_s20 = sadd.s32 1, %s3808_s17  ;;  %s3812_s18 = sphi %s3856_s18, %s4875_s18   ;;  %s3808_s17 = sphi %s3854_s17, %s4874_s17   ;;  %s3804_s16 = sphi %s3852_s16, %s4873_s16   ;;  %s3800_s15 = sphi %s3850_s15, %s4872_s15  }
   0x5   : > { %s43_s21 = ssub.s32 %s3812_s18, %s3871_s19  ;;  %p53_p0 = scmp.ne.s32.totalorder %s3808_s17, %s3804_s16 }
   0x6   : > { %p44_p1 = scmp.eq.s32.totalorder %s43_s21, 0  ;;  %p54_p2 = scmp.eq.s32.totalorder %s3812_s18, 0 }
   0x7   : > { %p3355_p4 = scmp.lt.s32.totalorder %s3812_s18, 2  ;;  %s174_s23 = sand.u32 1, %s3812_s18  }
   0x8   : > { %s3880_s22 = scalar_select %p44_p1, %s3808_s17, %s46_s20  }
   0x9   : > { %p55_p3 = por %p54_p2, %p53_p0  ;;  %s176_s24 = sand.u32 1, %s3808_s17  }
   0xa   : > { %s2567_s25 = sshll.u32 %s176_s24, 5  ;;  %s2710_s26 = sshll.u32 %s3812_s18, 9 }
   0xb   : > { %s3889_s29 = scalar_lea.hbm %s4855_s1, %s2710_s26  ;;  %s178_s30 = scalar_lea.vmem [#allocation4], %s2567_s25 }
   0xc   : > { %s185_s5 = sshll.u32 %s178_s30, 4  ;;  %p3891_p5 = pnand %p3355_p4, %p55_p3  ;;  %s3895_s5 = int_to_ptr.vmem [resolvable:$true] %s185_s5 }
   0xd   : > { %s3897_s7 = sshll.u32 %s176_s24, 4  ;;  %s3899_s8 = scalar_lea.sflag [#allocation5], %s174_s23 }
   0xe   : > { %s3686_s9 = scalar_lea.hbm %s3889_s29, 512  ;;  %p3688_p7 = pneg %p3891_p5 }
   0xf   : > { %p3687_p6 = scmp.ne.s32.totalorder %s3889_s29, %s3686_s9  ;;  %s3691_s12 = scalar_lea.hbm %s4855_s1, 1024 }
  0x10   : > { %p3692_p10 = scmp.lt.u32.totalorder %s3889_s29, %s4855_s1  ;;  %p3693_p11 = scmp.lt.u32.totalorder %s3691_s12, %s3686_s9 }
  0x11   : > { %p3689_p8 = pnand %p3688_p7, %p3687_p6  ;;  %p3695_p13 = scmp.lt.u32.totalorder %s3686_s9, %s3889_s29 }
  0x12   : > { %p3694_p12 = por %p3693_p11, %p3692_p10 }
  0x13   : > { %p3690_p9 = pneg %p3689_p8 }
  0x14   : > { %p3696_p0 = por %p3695_p13, %p3694_p12 }
  0x16   : > { %p3697_p1 = pnand %p3696_p0, %p3690_p9 }
  0x18   : > { %3700 = shalt.err (!%p3697_p1)
}
  0x19   : > { %s3701_s20 = scalar_lea.vmem %s3895_s5, 512  ;;  %s3814_s21 = smov [#allocation4]  }
  0x1a   : > { %p3702_p2 = scmp.ne.s32.totalorder %s3895_s5, %s3701_s20  ;;  %s3706_s23 = sshll.u32 %s3814_s21, 4  ;;  %s3707_s23 = int_to_ptr.vmem [resolvable:$false] %s3706_s23 }
  0x1b   : > { %s3708_s24 = scalar_lea.vmem %s3707_s23, 1024  ;;  %p3709_p6 = scmp.lt.s32.totalorder %s3895_s5, %s3707_s23 }
  0x1c   : > { %p3704_p3 = pnand %p3702_p2, %p3688_p7  ;;  %p3710_p8 = scmp.lt.s32.totalorder %s3708_s24, %s3701_s20 }
  0x1e   : > { %p3705_p4 = pneg %p3704_p3  ;;  %p3711_p10 = por %p3710_p8, %p3709_p6 }
  0x20   : > { %p3712_p11 = pnand %p3711_p10, %p3705_p4 }
  0x22   : > { %3715 = shalt.err (!%p3712_p11)
}
  0x23   : > { %s3815_s25 = smov 128   ;;  %s3816_s26 = smov 8  }
  0x24   : > { %3350 = dma.hbm_to_vmem [thread:$0]  (!%p3891_p5), %s3889_s29, 512, %s3895_s5, %s3899_s8, %s3815_s25, %s3815_s25, %s3816_s26  }
  0x25   : > { %s205_s27 = scalar_lea.vmem [#allocation6], %s3897_s7  ;;  %s3932_s30 = sadd.s32 4294967295, %s3812_s18  }
  0x26   : > { %s212_s28 = sshll.u32 %s205_s27, 4  ;;  %p59_p9 = scmp.ne.s32.totalorder %s3804_s16, %s3800_s15  ;;  %s3957_s28 = int_to_ptr.vmem [resolvable:$true] %s212_s28 }
  0x27   : > { %p4859_p12 = scmp.eq.s32.totalorder %s3932_s30, 0  ;;  %p2564_p13 = scmp.ge.s32.totalorder %s3812_s18, 1 }
  0x28   : > { %p148_p0 = scmp.lt.s32.totalorder %s3812_s18, 3  ;;  %s3817_s29 = smov [#allocation2]  }
  0x29   : > { %p3941_p1 = por %p4859_p12, %p59_p9  ;;  %s160_s5 = sshll.u32 %s3817_s29, 4  ;;  %s3959_s5 = int_to_ptr.vmem [resolvable:$true] %s160_s5 }
  0x2a   : > { %p3945_p2 = pnand %p2564_p13, %p148_p0  ;;  %s2711_s7 = sshll.u32 %s3812_s18, 8 }
  0x2b   : > { %s4863_s9 = scalar_select %p3941_p1, 1, 0 }
  0x2c   : > { %s4864_s10 = scalar_select %p3945_p2, 1, 0 }
  0x2d   : > { %p3343_p3 = pneg %p3945_p2  ;;  %s3955_s12 = scalar_lea.hbm %s4857_s3, %s2711_s7 }
  0x2e   : > { %s3716_s18 = scalar_lea.hbm %s3955_s12, 256  ;;  %s3721_s21 = scalar_lea.hbm %s4857_s3, 512 }
  0x2f   : > { %p3963_p4 = pnand %p3343_p3, %p4859_p12  ;;  %p3717_p6 = scmp.ne.s32.totalorder %s3955_s12, %s3716_s18 }
  0x30   : > { %p3722_p11 = scmp.lt.u32.totalorder %s3955_s12, %s4857_s3  ;;  %p3723_p9 = scmp.lt.u32.totalorder %s3721_s21, %s3716_s18 }
  0x31   : > { %p3719_p8 = pnand %p3717_p6, %p3688_p7  ;;  %p3725_p0 = scmp.lt.u32.totalorder %s3716_s18, %s3955_s12 }
  0x32   : > { %p3724_p13 = por %p3723_p9, %p3722_p11 }
  0x33   : > { %p3720_p10 = pneg %p3719_p8 }
  0x34   : > { %p3726_p3 = por %p3725_p0, %p3724_p13 }
  0x36   : > { %p3727_p12 = pnand %p3726_p3, %p3720_p10 }
  0x38   : > { %3730 = shalt.err (!%p3727_p12)
}
  0x39   : > { %s3731_s27 = scalar_lea.vmem %s3957_s28, 256  ;;  %s3818_s29 = smov [#allocation6]  }
  0x3a   : > { %p3732_p6 = scmp.ne.s32.totalorder %s3957_s28, %s3731_s27  ;;  %s3736_s7 = sshll.u32 %s3818_s29, 4  ;;  %s3737_s7 = int_to_ptr.vmem [resolvable:$false] %s3736_s7 }
  0x3b   : > { %s3738_s15 = scalar_lea.vmem %s3737_s7, 512  ;;  %p3739_p2 = scmp.lt.s32.totalorder %s3957_s28, %s3737_s7 }
  0x3c   : > { %p3734_p8 = pnand %p3732_p6, %p3688_p7  ;;  %p3740_p11 = scmp.lt.s32.totalorder %s3738_s15, %s3731_s27 }
  0x3e   : > { %p3735_p1 = pneg %p3734_p8  ;;  %p3741_p9 = por %p3740_p11, %p3739_p2 }
  0x40   : > { %p3742_p13 = pnand %p3741_p9, %p3735_p1 }
  0x42   : > { %3745 = shalt.err (!%p3742_p13)
}
  0x43   : > { %3353 = dma.hbm_to_vmem [thread:$0]  (!%p3891_p5), %s3955_s12, 256, %s3957_s28, %s3899_s8, %s3815_s25, %s3815_s25, %s3816_s26  }
  0x44   : > { %s3746_s14 = scalar_lea.hbm %s4854_s0, 2048  ;;  %p3748_p12 = pneg %p3963_p4 }
  0x45   : > { %p3747_p7 = scmp.ne.s32.totalorder %s4854_s0, %s3746_s14  ;;  %p3753_p10 = scmp.lt.u32.totalorder %s3746_s14, %s4854_s0 }
  0x47   : > { %p3749_p1 = pnand %p3748_p12, %p3747_p7 }
  0x49   : > { %p3750_p2 = pneg %p3749_p1 }
  0x4b   : > { %p3755_p0 = pnand %p3753_p10, %p3750_p2 }
  0x4d   : > { %3758 = shalt.err (!%p3755_p0)
}
  0x4e   : > { %s3759_s8 = scalar_lea.vmem %s3959_s5, 2048  ;;  %p3767_p8 = scmp.lt.s32.totalorder %s3959_s5, %s3959_s5 }
  0x4f   : > { %p3760_p5 = scmp.ne.s32.totalorder %s3959_s5, %s3759_s8  ;;  %p3768_p11 = scmp.lt.s32.totalorder %s3759_s8, %s3759_s8 }
  0x51   : > { %p3762_p3 = pnand %p3760_p5, %p3748_p12  ;;  %p3769_p9 = por %p3768_p11, %p3767_p8 }
  0x53   : > { %p3763_p6 = pneg %p3762_p3 }
  0x55   : > { %p3770_p13 = pnand %p3769_p9, %p3763_p6 }
  0x57   : > { %3773 = shalt.err (!%p3770_p13)
}
  0x58   : > { %3346 = dma.hbm_to_vmem [thread:$0]  (!%p3963_p4), %s4854_s0, 2048, %s3959_s5, [#allocation3], %s3815_s25, %s3815_s25, %s3816_s26  }
  0x59   : > { %p4866_p7 = scmp.ne.s32.totalorder %s4864_s10, 0 }
  0x5a   : > { %p4867_p12 = scmp.eq.s32.totalorder (!%p4866_p7), %s3932_s30, 0 }
  0x5b   : > { %224 = sbr.rel (%p4866_p7) target bundleno = 2879 (0xb3f), region = 36 }
  0x62   : > { %3791 = dma.done.wait (%p4867_p12), [#allocation3], 2048   ;;  %p4868_p1 = pmov %p4867_p12 }
  0x63   : > { %s230_s13 = sand.u32 1, %s3932_s30   ;;  %s232_s24 = sand.u32 1, %s3804_s16  }
  0x64   : > { %3793 = vsyncadd (%p4868_p1), [#allocation3], 4294965248  ;;  %s2575_s27 = sshll.u32 %s232_s24, 5  ;;  %s231_s29 = scalar_lea.sflag [#allocation5], %s230_s13 }
  0x65   : > { %s234_s7 = scalar_lea.vmem [#allocation4], %s2575_s27  ;;  %p4869_p4 = scmp.ne.s32.totalorder %s4863_s9, 0 }
  0x67   : > { %3795 = dma.done.wait (%p4869_p4), %s231_s29, 768  }
  0x68   : > { %3797 = vsyncadd (%p4869_p4), %s231_s29, 4294966528  ;;  %vm311_vm0 = vcmask 261120   ;;  %v300_v0 = vld [vmem:[%s234_s7] sm:$0xff]  ;;  %v301_v1 = vld [vmem:[%s234_s7 + $0x8] sm:$0xff]  ;;  %p276_p2 = scmp.lt.s32.totalorder %s3932_s30, 1  ;;  %vm529_vm1 = vcmask 64512  }
  0x69   : > { %v302_v2 = vld [vmem:[%s234_s7 + $0x10] sm:$0xff]  ;;  %v3163_v3 = vpack.c.bf16 %v301_v1, %v300_v0  ;;  %v303_v4 = vld [vmem:[%s234_s7 + $0x18] sm:$0xff]  ;;  %v284_v5 = vld [vmem:[#allocation2] sm:$0xff]  ;;  %s3819_s10 = smov 112   ;;  %s3820_s5 = smov 104   ;;  %vm675_vm3 = vcmask 523264  }
  0x6a   : > { %v3167_v6 = vpack.c.bf16 %v303_v4, %v302_v2  ;;  %2887 = vmatprep.mubr.msk.f32.mxu1 %vm311_vm0, %v284_v5  ;;  %v285_v7 = vld [vmem:[#allocation2 + $0x8] sm:$0xff]  ;;  %v286_v8 = vld [vmem:[#allocation2 + $0x10] sm:$0xff]  ;;  %v287_v9 = vld [vmem:[#allocation2 + $0x18] sm:$0xff]  ;;  %s4877_s30 = smov (!%p276_p2, %s3932_s30), 1  ;;  %s3821_s15 = smov 120   ;;  %vm2245_vm4 = vcmask 130048  }
  0x6b   : > { %3164 = vmatprep.subr.bf16.mxu1 %v3163_v3  ;;  %v288_v10 = vld [vmem:[#allocation2 + $0x20] sm:$0xff]  ;;  %v289_v11 = vld [vmem:[#allocation2 + $0x28] sm:$0xff]  ;;  %v290_v12 = vld [vmem:[#allocation2 + $0x30] sm:$0xff]  ;;  %s278_s9 = scalar_lea.vmem %s4856_s2, %s4877_s30  ;;  %s3822_s11 = smov 96  }
  0x6c   : > { %3166 = vmatpush3.bf16.msra.mxu1 %v3163_v3  ;;  %v291_v13 = vld [vmem:[#allocation2 + $0x38] sm:$0xff]  ;;  %v292_v14 = vld [vmem:[#allocation2 + $0x40] sm:$0xff]  ;;  %v293_v15 = vld [vmem:[#allocation2 + $0x48] sm:$0xff]  ;;  %s3823_s18 = smov 88   ;;  %s3824_s14 = smov 8  }
  0x6d   : > { %3168 = vmatprep.subr.bf16.mxu1 %v3167_v6  ;;  %v294_v16 = vld [vmem:[#allocation2 + $0x50] sm:$0xff]  ;;  %v295_v17 = vld [vmem:[#allocation2 + $0x58] sm:$0xff]  ;;  %v296_v18 = vld [vmem:[#allocation2 + $0x60] sm:$0xff]  ;;  %s2576_s20 = sshll.u32 %s232_s24, 4  ;;  %s2712_s6 = sshll.u32 %s4877_s30, 7 }
  0x6e   : > { %v297_v19 = vld [vmem:[#allocation2 + $0x68] sm:$0xff]  ;;  %v298_v20 = vld [vmem:[#allocation2 + $0x70] sm:$0xff]  ;;  %v299_v21 = vld [vmem:[#allocation2 + $0x78] sm:$0xff]  ;;  %s243_s21 = scalar_lea.vmem [#allocation6], %s2576_s20  ;;  %s4783_s28 = scalar_lea.vmem %s4858_s4, %s2712_s6 }
  0x6f   : > { %v4056_v22 = vld [vmem:[%s278_s9] ss:$0 sm:$0xff]  ;;  %vm4145_vm2 = vmpackc.low %vm529_vm1, %vm529_vm1 }
  0x70   : > { %3170 = vmatpush3.bf16.msra.mxu1 %v3167_v6 }
  0x73   : > { %2888 = vmatmul.mubr.msk.f32.vlgmr.msra.gmra.mrb[0].mxu1 %vm311_vm0, %v285_v7 }
  0x74   : > { %2890 = vmatprep.mubr.msk.f32.mxu1 %vm311_vm0, %v286_v8 }
  0x77   : > { %2891 = vmatmul.mubr.msk.f32.gmra.mrb[2].mxu1 %vm311_vm0, %v287_v9 }
  0x78   : > { %2893 = vmatprep.mubr.msk.f32.mxu1 %vm311_vm0, %v288_v10 }
  0x7b   : > { %2894 = vmatmul.mubr.msk.f32.gmra.mrb[4].mxu1 %vm311_vm0, %v289_v11 }
  0x7c   : > { %2896 = vmatprep.mubr.msk.f32.mxu1 %vm311_vm0, %v290_v12 }
  0x7f   : > { %2897 = vmatmul.mubr.msk.f32.gmra.mrb[6].mxu1 %vm311_vm0, %v291_v13 }
  0x80   : > { %2899 = vmatprep.mubr.msk.f32.mxu1 %vm311_vm0, %v292_v14 }
  0x83   : > { %2900 = vmatmul.mubr.msk.f32.gmra.mrb[8].mxu1 %vm311_vm0, %v293_v15 }
  0x84   : > { %2902 = vmatprep.mubr.msk.f32.mxu1 %vm311_vm0, %v294_v16 }
  0x87   : > { %2903 = vmatmul.mubr.msk.f32.gmra.mrb[10].mxu1 %vm311_vm0, %v295_v17 }
  0x88   : > { %2905 = vmatprep.mubr.msk.f32.mxu1 %vm311_vm0, %v296_v18 }
  0x8b   : > { %2906 = vmatmul.mubr.msk.f32.gmra.mrb[12].mxu1 %vm311_vm0, %v297_v19 }
  0x8c   : > { %2908 = vmatprep.mubr.msk.f32.mxu1 %vm311_vm0, %v298_v20 }
  0x8f   : > { %2909 = vmatmul.mubr.msk.f32.gmra.mrb[14].mxu1 %vm311_vm0, %v299_v21 }
 0x146   : > { %v2889_v23 = vpop.f32.mrb[0].mxu1 }
 0x147   : > { %v4059_v24 = vadd.f32 %v2889_v23, %v4056_v22  ;;  %v426_v25 = vpop.f32.mrb[1].mxu1 }
 0x148   : > { %v427_v26 = vadd.f32 %v4056_v22, %v426_v25 }
 0x14a   : > { %v2892_v27 = vpop.f32.mrb[2].mxu1  ;;  %2927 = vmatprep.mubr.msk.f32.mxu1 %vm529_vm1, %v427_v26  ;;  %v3398_v28 = vpack.i.bf16 %v4059_v24, %v427_v26 }
 0x14b   : > { %v4065_v29 = vadd.f32 %v2892_v27, %v4056_v22  ;;  %v436_v30 = vpop.f32.mrb[3].mxu1 }
 0x14c   : > { %v4068_v31 = vadd.f32 %v4056_v22, %v436_v30  ;;  %3399 = vrot.lane.b32.xlu0 %v3398_v28, %s3819_s10 }
 0x14e   : > { %v2895_v32 = vpop.f32.mrb[4].mxu1  ;;  %v4073_v33 = vpack.i.bf16 %v4065_v29, %v4068_v31 }
 0x14f   : > { %v4076_v34 = vadd.f32 %v2895_v32, %v4056_v22  ;;  %v446_v35 = vpop.f32.mrb[5].mxu1 }
 0x150   : > { %v4079_v36 = vadd.f32 %v4056_v22, %v446_v35  ;;  %3404 = vrot.lane.b32.xlu0 %v4073_v33, %s3819_s10 }
 0x152   : > { %v2898_v37 = vpop.f32.mrb[6].mxu1  ;;  %v3408_v38 = vpack.i.bf16 %v4076_v34, %v4079_v36 }
 0x153   : > { %v4086_v39 = vadd.f32 %v2898_v37, %v4056_v22  ;;  %v456_v40 = vpop.f32.mrb[7].mxu1 }
 0x154   : > { %v4089_v41 = vadd.f32 %v4056_v22, %v456_v40  ;;  %3409 = vrot.lane.b32.xlu1 %v3408_v38, %s3819_s10  ;;  %3419 = vrot.lane.b32.xlu0 %v3398_v28, %s3820_s5 }
 0x156   : > { %v4095_v42 = vpack.i.bf16 %v4086_v39, %v4089_v41  ;;  %v4127_v43 = vpop.f32.mrb[8].mxu1 }
 0x157   : > { %v4129_v44 = vpop.f32.mrb[9].mxu1 }
 0x158   : > { %3414 = vrot.lane.b32.xlu1 %v4095_v42, %s3819_s10  ;;  %3429 = vrot.lane.b32.xlu0 %v3408_v38, %s3820_s5 }
 0x15a   : > { %v4131_v45 = vpop.f32.mrb[10].mxu1 }
 0x15b   : > { %v4133_v46 = vpop.f32.mrb[11].mxu1 }
 0x15c   : > { %3424 = vrot.lane.b32.xlu1 %v4073_v33, %s3820_s5  ;;  %917 = vrot.lane.b32.xlu0 %v427_v26, %s3821_s15 }
 0x15e   : > { %v4135_v47 = vpop.f32.mrb[12].mxu1 }
 0x15f   : > { %v4137_v48 = vpop.f32.mrb[13].mxu1 }
 0x160   : > { %3434 = vrot.lane.b32.xlu1 %v4095_v42, %s3820_s5  ;;  %921 = vrot.lane.b32.xlu0 %v4068_v31, %s3821_s15 }
 0x162   : > { %v4139_v49 = vpop.f32.mrb[14].mxu1 }
 0x163   : > { %v4141_v50 = vpop.f32.mrb[15].mxu1 }
 0x164   : > { %919 = vrot.lane.b32.xlu1 %v4059_v24, %s3821_s15  ;;  %925 = vrot.lane.b32.xlu0 %v4079_v36, %s3821_s15 }
 0x168   : > { %923 = vrot.lane.b32.xlu1 %v4065_v29, %s3821_s15  ;;  %929 = vrot.lane.b32.xlu0 %v4089_v41, %s3821_s15 }
 0x16c   : > { %927 = vrot.lane.b32.xlu1 %v4076_v34, %s3821_s15  ;;  %3439 = vrot.lane.b32.xlu0 %v3398_v28, %s3822_s11 }
 0x170   : > { %931 = vrot.lane.b32.xlu1 %v4086_v39, %s3821_s15  ;;  %3449 = vrot.lane.b32.xlu0 %v3408_v38, %s3822_s11 }
 0x174   : > { %3444 = vrot.lane.b32.xlu1 %v4073_v33, %s3822_s11  ;;  %3454 = vrot.lane.b32.xlu0 %v3398_v28, %s3823_s18 }
 0x178   : > { %3459 = vrot.lane.b32.xlu1 %v4095_v42, %s3822_s11  ;;  %3469 = vrot.lane.b32.xlu0 %v3408_v38, %s3823_s18 }
 0x1be   : > { %v3400_v51 = vpop.permute.xlu0 %3399 }
 0x1bf   : > { %v3402_v52 = vunpack.i.h.bf16 %v3400_v51  ;;  %v3401_v53 = vunpack.i.l.bf16 %v3400_v51 }
 0x1c1   : > { %v3171_v55 = vpack.c.bf16 %v3402_v52, %v3401_v53 }
 0x1c2   : > { %v3405_v56 = vpop.permute.xlu0 %3404 }
 0x1c3   : > { %v3407_v57 = vunpack.i.h.bf16 %v3405_v56  ;;  %v3406_v58 = vunpack.i.l.bf16 %v3405_v56  ;;  %3173 = vmatprep.subr.msk.bf16.mxu1 %vm4145_vm2, %v3171_v55 }
 0x1c4   : > { %3176 = vmatpush3.bf16.xpose.msk.msra.mxu1 %vm4145_vm2, %v3171_v55 }
 0x1c5   : > { %v3177_v59 = vpack.c.bf16 %v3407_v57, %v3406_v58 }
 0x1c6   : > { %v3410_v60 = vpop.permute.xlu1 %3409  ;;  %v3420_v61 = vpop.permute.xlu0 %3419 }
 0x1c7   : > { %v3412_v62 = vunpack.i.h.bf16 %v3410_v60  ;;  %v3411_v63 = vunpack.i.l.bf16 %v3410_v60  ;;  %3179 = vmatprep.subr.msk.bf16.mxu1 %vm4145_vm2, %v3177_v59  ;;  %v3422_v12 = vunpack.i.h.bf16 %v3420_v61  ;;  %v3421_v13 = vunpack.i.l.bf16 %v3420_v61 }
 0x1c9   : > { %v3183_v0 = vpack.c.bf16 %v3412_v62, %v3411_v63  ;;  %v3211_v16 = vpack.c.bf16 %v3422_v12, %v3421_v13 }
 0x1ca   : > { %v3415_v1 = vpop.permute.xlu1 %3414  ;;  %v3430_v2 = vpop.permute.xlu0 %3429 }
 0x1cb   : > { %v3417_v3 = vunpack.i.h.bf16 %v3415_v1  ;;  %v3416_v4 = vunpack.i.l.bf16 %v3415_v1  ;;  %v3431_v40 = vunpack.i.l.bf16 %v3430_v2 }
 0x1cc   : > { %3182 = vmatpush3.bf16.xpose.msk.msra.mxu1 %vm4145_vm2, %v3177_v59 }
 0x1cd   : > { %3185 = vmatprep.subr.msk.bf16.mxu1 %vm4145_vm2, %v3183_v0  ;;  %v3189_v7 = vpack.c.bf16 %v3417_v3, %v3416_v4 }
 0x1ce   : > { %v3425_v5 = vpop.permute.xlu1 %3424  ;;  %v918_v6 = vpop.permute.xlu0 %917 }
 0x1cf   : > { %v3427_v21 = vunpack.i.h.bf16 %v3425_v5  ;;  %v3426_v23 = vunpack.i.l.bf16 %v3425_v5 }
 0x1d1   : > { %v3217_v27 = vpack.c.bf16 %v3427_v21, %v3426_v23 }
 0x1d2   : > { %v4159_v8 = vpop.permute.xlu1 %3434  ;;  %v4161_v9 = vpop.permute.xlu0 %921 }
 0x1d3   : > { %v3437_v58 = vunpack.i.h.bf16 %v4159_v8  ;;  %v3436_v59 = vunpack.i.l.bf16 %v4159_v8 }
 0x1d4   : > { %3188 = vmatpush3.bf16.xpose.msk.msra.mxu1 %vm4145_vm2, %v3183_v0 }
 0x1d5   : > { %3191 = vmatprep.subr.msk.bf16.mxu1 %vm4145_vm2, %v3189_v7  ;;  %v3229_v60 = vpack.c.bf16 %v3437_v58, %v3436_v59 }
 0x1d6   : > { %v4167_v10 = vpop.permute.xlu1 %919  ;;  %v4169_v11 = vpop.permute.xlu0 %925 }
 0x1da   : > { %v924_v14 = vpop.permute.xlu1 %923  ;;  %v4171_v15 = vpop.permute.xlu0 %929 }
 0x1dc   : > { %3194 = vmatpush3.bf16.xpose.msk.msra.mxu1 %vm4145_vm2, %v3189_v7 }
 0x1dd   : > { %3213 = vmatprep.subr.msk.bf16.mxu1 %vm4145_vm2, %v3211_v16 }
 0x1de   : > { %v928_v17 = vpop.permute.xlu1 %927  ;;  %v3440_v18 = vpop.permute.xlu0 %3439 }
 0x1df   : > { %v3442_v19 = vunpack.i.h.bf16 %v3440_v18  ;;  %v3441_v20 = vunpack.i.l.bf16 %v3440_v18 }
 0x1e1   : > { %v3195_v25 = vpack.c.bf16 %v3442_v19, %v3441_v20 }
 0x1e2   : > { %v932_v26 = vpop.permute.xlu1 %931  ;;  %v3450_v28 = vpop.permute.xlu0 %3449 }
 0x1e3   : > { %2928 = vmatmul.mubr.msk.f32.vlgmr.msra.gmra.mrb[16].mxu1 %vm529_vm1, %v4059_v24  ;;  %3196 = vmatprep.subr.bf16.mxu0 %v3195_v25  ;;  %v3452_v32 = vunpack.i.h.bf16 %v3450_v28  ;;  %v3451_v35 = vunpack.i.l.bf16 %v3450_v28  ;;  %v3432_v24 = vunpack.i.h.bf16 %v3430_v2 }
 0x1e4   : > { %2930 = vmatprep.mubr.msk.f32.mxu1 %vm529_vm1, %v4068_v31  ;;  %3198 = vmatpush3.bf16.msra.mxu0 %v3195_v25 }
 0x1e5   : > { %3216 = vmatpush3.bf16.xpose.msk.msra.mxu1 %vm4145_vm2, %v3211_v16  ;;  %v3203_v55 = vpack.c.bf16 %v3452_v32, %v3451_v35  ;;  %v3223_v56 = vpack.c.bf16 %v3432_v24, %v3431_v40 }
 0x1e6   : > { %3219 = vmatprep.subr.msk.bf16.mxu1 %vm4145_vm2, %v3217_v27  ;;  %v3445_v30 = vpop.permute.xlu1 %3444  ;;  %v3455_v57 = vpop.permute.xlu0 %3454 }
 0x1e7   : > { %v3447_v37 = vunpack.i.h.bf16 %v3445_v30  ;;  %v3446_v38 = vunpack.i.l.bf16 %v3445_v30  ;;  %2931 = vmatmul.mubr.msk.f32.gmra.mrb[18].mxu1 %vm529_vm1, %v4065_v29  ;;  %v3457_v29 = vunpack.i.h.bf16 %v3455_v57 }
 0x1e8   : > { %2933 = vmatprep.mubr.msk.f32.mxu1 %vm529_vm1, %v4079_v36  ;;  %v3456_v36 = vunpack.i.l.bf16 %v3455_v57 }
 0x1e9   : > { %v3199_v31 = vpack.c.bf16 %v3447_v37, %v3446_v38 }
 0x1ea   : > { %v3460_v51 = vpop.permute.xlu1 %3459 }
 0x1eb   : > { %v3462_v52 = vunpack.i.h.bf16 %v3460_v51  ;;  %v3461_v53 = vunpack.i.l.bf16 %v3460_v51  ;;  %2934 = vmatmul.mubr.msk.f32.gmra.mrb[20].mxu1 %vm529_vm1, %v4076_v34  ;;  %3200 = vmatprep.subr.bf16.mxu0 %v3199_v31 }
 0x1ec   : > { %2936 = vmatprep.mubr.msk.f32.mxu1 %vm529_vm1, %v4089_v41  ;;  %3202 = vmatpush3.bf16.msra.mxu0 %v3199_v31  ;;  %v4202_v41 = vpack.c.bf16 %v3457_v29, %v3456_v36 }
 0x1ed   : > { %3222 = vmatpush3.bf16.xpose.msk.msra.mxu1 %vm4145_vm2, %v3217_v27  ;;  %3204 = vmatprep.subr.bf16.mxu0 %v3203_v55  ;;  %v3207_v34 = vpack.c.bf16 %v3462_v52, %v3461_v53 }
 0x1ee   : > { %3225 = vmatprep.subr.msk.bf16.mxu1 %vm4145_vm2, %v3223_v56 }
 0x1ef   : > { %2937 = vmatmul.mubr.msk.f32.gmra.mrb[22].mxu1 %vm529_vm1, %v4086_v39 }
 0x1f0   : > { %3206 = vmatpush3.bf16.msra.mxu0 %v3203_v55  ;;  %2983 = vmatprep.mubr.msk.f32.mxu1 %vm529_vm1, %v918_v6 }
 0x1f1   : > { %3208 = vmatprep.subr.bf16.mxu0 %v3207_v34 }
 0x1f4   : > { %3210 = vmatpush3.bf16.msra.mxu0 %v3207_v34  ;;  %v4290_v34 = vpop.permute.xlu0 %3469 }
 0x1f5   : > { %3228 = vmatpush3.bf16.xpose.msk.msra.mxu1 %vm4145_vm2, %v3223_v56  ;;  %3236 = vmatprep.subr.bf16.mxu0 %v4202_v41 }
 0x1f6   : > { %3231 = vmatprep.subr.msk.bf16.mxu1 %vm4145_vm2, %v3229_v60 }
 0x1fd   : > { %3234 = vmatpush3.bf16.xpose.msk.msra.mxu1 %vm4145_vm2, %v3229_v60 }
 0x204   : > { %2984 = vmatmul.mubr.msk.f32.vlgmr.msra.gmra.mrb[24].mxu1 %vm529_vm1, %v4167_v10 }
 0x205   : > { %2986 = vmatprep.mubr.msk.f32.mxu1 %vm529_vm1, %v4161_v9 }
 0x208   : > { %2987 = vmatmul.mubr.msk.f32.gmra.mrb[26].mxu1 %vm529_vm1, %v924_v14 }
 0x209   : > { %2989 = vmatprep.mubr.msk.f32.mxu1 %vm529_vm1, %v4169_v11 }
 0x20c   : > { %2990 = vmatmul.mubr.msk.f32.gmra.mrb[28].mxu1 %vm529_vm1, %v928_v17 }
 0x20d   : > { %2992 = vmatprep.mubr.msk.f32.mxu1 %vm529_vm1, %v4171_v15 }
 0x210   : > { %2993 = vmatmul.mubr.msk.f32.gmra.mrb[30].mxu1 %vm529_vm1, %v932_v26 }
 0x2b6   : > { %v2929_v39 = vpop.f32.mrb[16].mxu1 }
 0x2b7   : > { %v4222_v61 = vmul.f32 0.35355338, %v2929_v39  ;;  %v628_v62 = vpop.f32.mrb[17].mxu1 }
 0x2b8   : > { %v4224_v63 = vmul.f32 0.35355338, %v628_v62 }
 0x2b9   : > { %v679_v0 = vsel %vm675_vm3, %v4222_v61, -inf }
 0x2ba   : > { %680 = vmax.xlane.f32.xlu1 %v679_v0  ;;  %v2932_v1 = vpop.f32.mrb[18].mxu1  ;;  %v676_v2 = vsel %vm675_vm3, %v4224_v63, -inf }
 0x2bb   : > { %v4230_v3 = vmul.f32 0.35355338, %v2932_v1  ;;  %677 = vmax.xlane.f32.xlu0 %v676_v2  ;;  %v638_v4 = vpop.f32.mrb[19].mxu1 }
 0x2bc   : > { %v4234_v6 = vmul.f32 0.35355338, %v638_v4 }
 0x2bd   : > { %v685_v5 = vsel %vm675_vm3, %v4230_v3, -inf }
 0x2be   : > { %v2935_v7 = vpop.f32.mrb[20].mxu1  ;;  %v682_v11 = vsel %vm675_vm3, %v4234_v6, -inf }
 0x2bf   : > { %686 = vmax.xlane.f32.xlu0 %v685_v5  ;;  %v648_v8 = vpop.f32.mrb[21].mxu1  ;;  %v4236_v9 = vmul.f32 0.35355338, %v2935_v7 }
 0x2c0   : > { %v4264_v38 = vmul.f32 0.35355338, %v648_v8 }
 0x2c1   : > { %v691_v14 = vsel %vm675_vm3, %v4236_v9, -inf }
 0x2c2   : > { %v2938_v10 = vpop.f32.mrb[22].mxu1  ;;  %v688_v40 = vsel %vm675_vm3, %v4264_v38, -inf }
 0x2c3   : > { %683 = vmax.xlane.f32.xlu0 %v682_v11  ;;  %v658_v12 = vpop.f32.mrb[23].mxu1  ;;  %v4240_v13 = vmul.f32 0.35355338, %v2938_v10 }
 0x2c4   : > { %v4266_v24 = vmul.f32 0.35355338, %v658_v12 }
 0x2c5   : > { %v697_v15 = vsel %vm675_vm3, %v4240_v13, -inf }
 0x2c6   : > { %v694_v51 = vsel %vm675_vm3, %v4266_v24, -inf }
 0x2c7   : > { %692 = vmax.xlane.f32.xlu0 %v691_v14 }
 0x2cb   : > { %3464 = vrot.lane.b32.xlu1 %v4073_v33, %s3823_s18  ;;  %698 = vmax.xlane.f32.xlu0 %v697_v15 }
 0x2d7   : > { %v2985_v16 = vpop.f32.mrb[24].mxu1 }
 0x2d8   : > { %v4248_v17 = vmul.f32 0.35355338, %v2985_v16  ;;  %v1047_v18 = vpop.f32.mrb[25].mxu1 }
 0x2d9   : > { %v4270_v31 = vmul.f32 0.35355338, %v1047_v18 }
 0x2da   : > { %v1097_v19 = vsel %vm675_vm3, %v4248_v17, -inf }
 0x2db   : > { %1098 = vmax.xlane.f32.xlu0 %v1097_v19  ;;  %v2988_v20 = vpop.f32.mrb[26].mxu1  ;;  %v1094_v53 = vsel %vm675_vm3, %v4270_v31, -inf }
 0x2dc   : > { %v4252_v21 = vmul.f32 0.35355338, %v2988_v20  ;;  %v1057_v23 = vpop.f32.mrb[27].mxu1 }
 0x2dd   : > { %v4274_v52 = vmul.f32 0.35355338, %v1057_v23 }
 0x2de   : > { %v1103_v25 = vsel %vm675_vm3, %v4252_v21, -inf }
 0x2df   : > { %1104 = vmax.xlane.f32.xlu0 %v1103_v25  ;;  %v2991_v26 = vpop.f32.mrb[28].mxu1  ;;  %v1100_v56 = vsel %vm675_vm3, %v4274_v52, -inf }
 0x2e0   : > { %v4256_v27 = vmul.f32 0.35355338, %v2991_v26  ;;  %v1067_v33 = vpop.f32.mrb[29].mxu1 }
 0x2e1   : > { %v4278_v55 = vmul.f32 0.35355338, %v1067_v33 }
 0x2e2   : > { %v1109_v28 = vsel %vm675_vm3, %v4256_v27, -inf }
 0x2e3   : > { %1110 = vmax.xlane.f32.xlu0 %v1109_v28  ;;  %v2994_v30 = vpop.f32.mrb[30].mxu1  ;;  %v1106_v29 = vsel %vm675_vm3, %v4278_v55, -inf }
 0x2e4   : > { %v4260_v32 = vmul.f32 0.35355338, %v2994_v30  ;;  %v1077_v35 = vpop.f32.mrb[31].mxu1 }
 0x2e5   : > { %v4284_v57 = vmul.f32 0.35355338, %v1077_v35 }
 0x2e6   : > { %v1115_v37 = vsel %vm675_vm3, %v4260_v32, -inf }
 0x2e7   : > { %1116 = vmax.xlane.f32.xlu0 %v1115_v37  ;;  %v1112_v36 = vsel %vm675_vm3, %v4284_v57, -inf }
 0x2ef   : > { %689 = vmax.xlane.f32.xlu1 %v688_v40 }
 0x2f3   : > { %695 = vmax.xlane.f32.xlu1 %v694_v51 }
 0x2f7   : > { %1095 = vmax.xlane.f32.xlu1 %v1094_v53 }
 0x2fb   : > { %1101 = vmax.xlane.f32.xlu1 %v1100_v56 }
 0x2fd   : > { %3474 = vrot.lane.b32.xlu0 %v4095_v42, %s3823_s18 }
 0x2ff   : > { %1107 = vmax.xlane.f32.xlu1 %v1106_v29 }
 0x303   : > { %1113 = vmax.xlane.f32.xlu1 %v1112_v36 }
 0x347   : > { %v681_v58 = vpop.xlane.xlu1 %680 }
 0x348   : > { %v701_v59 = vsub.f32 %v4222_v61, %v681_v58  ;;  %v678_v60 = vpop.xlane.xlu0 %677 }
 0x349   : > { %v700_v39 = vsub.f32 %v4224_v63, %v678_v60 }
 0x34a   : > { %v710_v62 = vmul.f32 1.442695, %v701_v59 }
 0x34b   : > { %v708_v42 = vmul.f32 1.442695, %v700_v39  ;;  %v4317_v20 = vpop.permute.xlu1 %3464 }
 0x34c   : > { %3558 = vpow2.f32 %v710_v62  ;;  %v687_v0 = vpop.xlane.xlu0 %686 }
 0x34d   : > { %3560 = vpow2.f32 %v708_v42  ;;  %v703_v1 = vsub.f32 %v4230_v3, %v687_v0 }
 0x34f   : > { %v714_v2 = vmul.f32 1.442695, %v703_v1 }
 0x350   : > { %v684_v4 = vpop.xlane.xlu0 %683 }
 0x351   : > { %3562 = vpow2.f32 %v714_v2  ;;  %v702_v5 = vsub.f32 %v4234_v6, %v684_v4 }
 0x353   : > { %v712_v7 = vmul.f32 1.442695, %v702_v5 }
 0x354   : > { %v693_v8 = vpop.xlane.xlu0 %692 }
 0x355   : > { %3564 = vpow2.f32 %v712_v7  ;;  %v705_v61 = vsub.f32 %v4236_v9, %v693_v8 }
 0x356   : > { %v4297_v10 = vpop.eup %3558 }
 0x357   : > { %v4299_v63 = vpop.eup %3560  ;;  %v718_v11 = vmul.f32 1.442695, %v705_v61  ;;  %v727_v12 = vsel %vm675_vm3, %v4297_v10, 0.0 }
 0x358   : > { %728 = vadd.xlane.f32.xlu0 %v727_v12  ;;  %v724_v3 = vsel %vm675_vm3, %v4299_v63, 0.0  ;;  %v699_v19 = vpop.xlane.xlu0 %698 }
 0x359   : > { %3566 = vpow2.f32 %v718_v11  ;;  %725 = vadd.xlane.f32.xlu1 %v724_v3  ;;  %v707_v25 = vsub.f32 %v4240_v13, %v699_v19 }
 0x35b   : > { %v4305_v6 = vpop.eup %3562  ;;  %v722_v30 = vmul.f32 1.442695, %v707_v25 }
 0x35c   : > { %v733_v14 = vsel %vm675_vm3, %v4305_v6, 0.0 }
 0x35d   : > { %734 = vadd.xlane.f32.xlu1 %v733_v14 }
 0x35f   : > { %v4309_v9 = vpop.eup %3564 }
 0x360   : > { %v730_v15 = vsel %vm675_vm3, %v4309_v9, 0.0 }
 0x361   : > { %731 = vadd.xlane.f32.xlu1 %v730_v15  ;;  %v4360_v15 = vadd.f32 %v4127_v43, %v4056_v22 }
 0x363   : > { %v4313_v16 = vpop.eup %3566 }
 0x364   : > { %v739_v18 = vsel %vm675_vm3, %v4313_v16, 0.0 }
 0x365   : > { %740 = vadd.xlane.f32.xlu0 %v739_v18  ;;  %v4364_v18 = vadd.f32 %v4056_v22, %v4129_v44 }
 0x368   : > { %v4319_v23 = vpop.xlane.xlu0 %1098 }
 0x369   : > { %v1119_v44 = vsub.f32 %v4248_v17, %v4319_v23  ;;  %v4410_v23 = vadd.f32 %v4135_v47, %v4056_v22 }
 0x36c   : > { %v4323_v28 = vpop.xlane.xlu0 %1104 }
 0x370   : > { %v1111_v53 = vpop.xlane.xlu0 %1110 }
 0x371   : > { %v1123_v36 = vsub.f32 %v4256_v27, %v1111_v53 }
 0x373   : > { %v1136_v60 = vmul.f32 1.442695, %v1123_v36  ;;  %v4422_v36 = vadd.f32 %v4056_v22, %v4141_v50 }
 0x374   : > { %v1117_v62 = vpop.xlane.xlu0 %1116 }
 0x378   : > { %v3475_v47 = vpop.permute.xlu0 %3474 }
 0x37c   : > { %v690_v26 = vpop.xlane.xlu1 %689 }
 0x37d   : > { %v704_v33 = vsub.f32 %v4264_v38, %v690_v26 }
 0x37f   : > { %v716_v35 = vmul.f32 1.442695, %v704_v33  ;;  %v4374_v33 = vpack.i.bf16 %v4360_v15, %v4364_v18 }
 0x380   : > { %v696_v37 = vpop.xlane.xlu1 %695 }
 0x381   : > { %3568 = vpow2.f32 %v716_v35  ;;  %v706_v40 = vsub.f32 %v4266_v24, %v696_v37  ;;  %v1128_v35 = vmul.f32 1.442695, %v1119_v44  ;;  %v1121_v37 = vsub.f32 %v4252_v21, %v4323_v28 }
 0x382   : > { %3570 = vpow2.f32 %v722_v30  ;;  %v4414_v28 = vadd.f32 %v4056_v22, %v4137_v48 }
 0x383   : > { %v720_v51 = vmul.f32 1.442695, %v706_v40  ;;  %v4388_v40 = vadd.f32 %v4131_v45, %v4056_v22  ;;  %v1132_v53 = vmul.f32 1.442695, %v1121_v37 }
 0x384   : > { %v1096_v56 = vpop.xlane.xlu1 %1095 }
 0x385   : > { %v1118_v29 = vsub.f32 %v4270_v31, %v1096_v56  ;;  %3572 = vpow2.f32 %v720_v51  ;;  %v1125_v31 = vsub.f32 %v4260_v32, %v1117_v62  ;;  %v4392_v51 = vadd.f32 %v4056_v22, %v4133_v46 }
 0x386   : > { %v3466_v62 = vunpack.i.l.bf16 %v4317_v20 }
 0x387   : > { %v1126_v13 = vmul.f32 1.442695, %v1118_v29  ;;  %v1140_v7 = vmul.f32 1.442695, %v1125_v31  ;;  %v4396_v56 = vpack.i.bf16 %v4388_v40, %v4392_v51  ;;  %v4418_v29 = vadd.f32 %v4139_v49, %v4056_v22 }
 0x388   : > { %v1102_v58 = vpop.xlane.xlu1 %1101  ;;  %v3471_v31 = vunpack.i.l.bf16 %v4290_v34 }
 0x389   : > { %3574 = vpow2.f32 %v1126_v13  ;;  %v1120_v38 = vsub.f32 %v4274_v52, %v1102_v58  ;;  %v4426_v13 = vpack.i.bf16 %v4410_v23, %v4414_v28  ;;  %v4432_v48 = vpack.i.bf16 %v4418_v29, %v4422_v36 }
 0x38b   : > { %v4329_v59 = vpop.eup %3568  ;;  %v1130_v39 = vmul.f32 1.442695, %v1120_v38 }
 0x38c   : > { %v1108_v24 = vpop.xlane.xlu1 %1107  ;;  %v736_v42 = vsel %vm675_vm3, %v4329_v59, 0.0  ;;  %v4333_v0 = vpop.eup %3570 }
 0x38d   : > { %3576 = vpow2.f32 %v1130_v39  ;;  %v1122_v27 = vsub.f32 %v4278_v55, %v1108_v24  ;;  %737 = vadd.xlane.f32.xlu1 %v736_v42  ;;  %v745_v2 = vsel %vm675_vm3, %v4333_v0, 0.0  ;;  %v3467_v39 = vunpack.i.h.bf16 %v4317_v20 }
 0x38e   : > { %3578 = vpow2.f32 %v1136_v60  ;;  %v3476_v20 = vunpack.i.l.bf16 %v3475_v47 }
 0x38f   : > { %v1134_v1 = vmul.f32 1.442695, %v1122_v27  ;;  %v4339_v4 = vpop.eup %3572  ;;  %v3472_v27 = vunpack.i.h.bf16 %v4290_v34 }
 0x390   : > { %v1114_v52 = vpop.xlane.xlu1 %1113  ;;  %v742_v55 = vsel %vm675_vm3, %v4339_v4, 0.0 }
 0x391   : > { %746 = vadd.xlane.f32.xlu1 %v745_v2  ;;  %3580 = vpow2.f32 %v1134_v1  ;;  %v1124_v8 = vsub.f32 %v4284_v57, %v1114_v52  ;;  %v3239_v1 = vpack.c.bf16 %v3467_v39, %v3466_v62 }
 0x392   : > { %3582 = vpow2.f32 %v1140_v7  ;;  %v3477_v7 = vunpack.i.h.bf16 %v3475_v47 }
 0x393   : > { %v4341_v5 = vpop.eup %3574  ;;  %v1138_v11 = vmul.f32 1.442695, %v1124_v8  ;;  %v3243_v8 = vpack.c.bf16 %v3472_v27, %v3471_v31 }
 0x394   : > { %v1142_v32 = vsel %vm675_vm3, %v4341_v5, 0.0  ;;  %v3247_v34 = vpack.c.bf16 %v3477_v7, %v3476_v20 }
 0x395   : > { %743 = vadd.xlane.f32.xlu1 %v742_v55  ;;  %1143 = vadd.xlane.f32.xlu0 %v1142_v32  ;;  %3584 = vpow2.f32 %v1138_v11 }
 0x396   : > { %3586 = vpow2.f32 %v1128_v35 }
 0x397   : > { %v4348_v61 = vpop.eup %3576  ;;  %3588 = vpow2.f32 %v1132_v53 }
 0x398   : > { %v1148_v12 = vsel %vm675_vm3, %v4348_v61, 0.0  ;;  %v4352_v3 = vpop.eup %3578 }
 0x399   : > { %1149 = vadd.xlane.f32.xlu0 %v1148_v12  ;;  %v1157_v57 = vsel %vm675_vm3, %v4352_v3, 0.0 }
 0x39b   : > { %v4356_v14 = vpop.eup %3580 }
 0x39c   : > { %v1154_v19 = vsel %vm675_vm3, %v4356_v14, 0.0  ;;  %v4368_v25 = vpop.eup %3582 }
 0x39d   : > { %1158 = vadd.xlane.f32.xlu0 %v1157_v57  ;;  %v1163_v26 = vsel %vm675_vm3, %v4368_v25, 0.0 }
 0x39f   : > { %v4376_v30 = vpop.eup %3584 }
 0x3a0   : > { %v1160_v43 = vsel %vm675_vm3, %v4376_v30, 0.0  ;;  %v4400_v17 = vpop.eup %3586 }
 0x3a1   : > { %1155 = vadd.xlane.f32.xlu0 %v1154_v19  ;;  %v1145_v45 = vsel %vm675_vm3, %v4400_v17, 0.0  ;;  %v4404_v21 = vpop.eup %3588 }
 0x3a2   : > { %v1151_v46 = vsel %vm675_vm3, %v4404_v21, 0.0 }
 0x3a5   : > { %1164 = vadd.xlane.f32.xlu0 %v1163_v26 }
 0x3a6   : > { %3479 = vrot.lane.b32.xlu1 %v4374_v33, %s3819_s10 }
 0x3a9   : > { %1161 = vadd.xlane.f32.xlu0 %v1160_v43 }
 0x3bf   : > { %3484 = vrot.lane.b32.xlu0 %v4396_v56, %s3819_s10 }
 0x3ca   : > { %1146 = vadd.xlane.f32.xlu1 %v1145_v45 }
 0x3ce   : > { %1152 = vadd.xlane.f32.xlu1 %v1151_v46 }
 0x3df   : > { %3489 = vrot.lane.b32.xlu1 %v4426_v13, %s3819_s10 }
 0x3e3   : > { %3494 = vrot.lane.b32.xlu1 %v4432_v48, %s3819_s10 }
 0x3e5   : > { %v729_v49 = vpop.xlane.xlu0 %728 }
 0x3e6   : > { %3590 = vrcp.f32 %v729_v49  ;;  %v726_v58 = vpop.xlane.xlu1 %725 }
 0x3e7   : > { %3592 = vrcp.f32 %v726_v58  ;;  %3499 = vrot.lane.b32.xlu1 %v4374_v33, %s3822_s11 }
 0x3ea   : > { %v735_v22 = vpop.xlane.xlu1 %734 }
 0x3eb   : > { %3594 = vrcp.f32 %v735_v22 }
 0x3ee   : > { %v732_v50 = vpop.xlane.xlu1 %731 }
 0x3ef   : > { %3596 = vrcp.f32 %v732_v50 }
 0x3f0   : > { %v3591_v38 = vpop.eup %3590 }
 0x3f1   : > { %v3593_v60 = vpop.eup %3592  ;;  %v757_v42 = vmul.f32 %v3591_v38, %v4297_v10 }
 0x3f2   : > { %v756_v24 = vmul.f32 %v3593_v60, %v4299_v63 }
 0x3f4   : > { %2955 = vmatprep.mubr.msk.f32.mxu0 %vm675_vm3, %v756_v24 }
 0x3f5   : > { %2956 = vmatmul.mubr.msk.f32.vlgmr.msra.gmra.mrb[0].mxu0 %vm675_vm3, %v757_v42  ;;  %v3595_v52 = vpop.eup %3594 }
 0x3f6   : > { %3238 = vmatpush3.bf16.msra.mxu0 %v4202_v41  ;;  %v759_v63 = vmul.f32 %v3595_v52, %v4305_v6  ;;  %v741_v41 = vpop.xlane.xlu0 %740 }
 0x3f7   : > { %3240 = vmatprep.subr.bf16.mxu0 %v3239_v1  ;;  %3598 = vrcp.f32 %v741_v41 }
 0x3f9   : > { %v3597_v2 = vpop.eup %3596 }
 0x3fa   : > { %3242 = vmatpush3.bf16.msra.mxu0 %v3239_v1  ;;  %v758_v10 = vmul.f32 %v3597_v2, %v4309_v9 }
 0x3fb   : > { %3244 = vmatprep.subr.bf16.mxu0 %v3243_v8 }
 0x3fc   : > { %2958 = vmatprep.mubr.msk.f32.mxu0 %vm675_vm3, %v758_v10 }
 0x3fd   : > { %2959 = vmatmul.mubr.msk.f32.gmra.mrb[2].mxu0 %vm675_vm3, %v759_v63 }
 0x3fe   : > { %3246 = vmatpush3.bf16.msra.mxu0 %v3243_v8 }
 0x3ff   : > { %3248 = vmatprep.subr.bf16.mxu0 %v3247_v34 }
 0x401   : > { %v3599_v9 = vpop.eup %3598 }
 0x402   : > { %3250 = vmatpush3.bf16.msra.mxu0 %v3247_v34  ;;  %v761_v44 = vmul.f32 %v3599_v9, %v4313_v16 }
 0x41a   : > { %v738_v55 = vpop.xlane.xlu1 %737 }
 0x41b   : > { %3600 = vrcp.f32 %v738_v55 }
 0x41e   : > { %v747_v32 = vpop.xlane.xlu1 %746 }
 0x41f   : > { %3602 = vrcp.f32 %v747_v32 }
 0x422   : > { %v1144_v11 = vpop.xlane.xlu0 %1143  ;;  %v744_v12 = vpop.xlane.xlu1 %743 }
 0x423   : > { %3604 = vrcp.f32 %v1144_v11 }
 0x424   : > { %3606 = vrcp.f32 %v744_v12 }
 0x425   : > { %v3601_v6 = vpop.eup %3600 }
 0x426   : > { %v3480_v57 = vpop.permute.xlu1 %3479  ;;  %v760_v19 = vmul.f32 %v3601_v6, %v4329_v59  ;;  %v1150_v16 = vpop.xlane.xlu0 %1149 }
 0x427   : > { %v3482_v26 = vunpack.i.h.bf16 %v3480_v57  ;;  %v3481_v43 = vunpack.i.l.bf16 %v3480_v57  ;;  %3608 = vrcp.f32 %v1150_v16 }
 0x428   : > { %2961 = vmatprep.mubr.msk.f32.mxu0 %vm675_vm3, %v760_v19 }
 0x429   : > { %v3251_v35 = vpack.c.bf16 %v3482_v26, %v3481_v43  ;;  %2962 = vmatmul.mubr.msk.f32.gmra.mrb[4].mxu0 %vm675_vm3, %v761_v44  ;;  %v3603_v37 = vpop.eup %3602 }
 0x42a   : > { %v763_v47 = vmul.f32 %v3603_v37, %v4333_v0  ;;  %v1159_v49 = vpop.xlane.xlu0 %1158 }
 0x42b   : > { %3253 = vmatprep.subr.msk.bf16.mxu0 %vm4145_vm2, %v3251_v35 }
 0x42d   : > { %v3605_v53 = vpop.eup %3604 }
 0x42e   : > { %v3607_v45 = vpop.eup %3606  ;;  %v1174_v59 = vmul.f32 %v3605_v53, %v4341_v5  ;;  %v1156_v58 = vpop.xlane.xlu0 %1155 }
 0x42f   : > { %v762_v46 = vmul.f32 %v3607_v45, %v4339_v4 }
 0x431   : > { %2964 = vmatprep.mubr.msk.f32.mxu0 %vm675_vm3, %v762_v46  ;;  %v3609_v5 = vpop.eup %3608 }
 0x432   : > { %2965 = vmatmul.mubr.msk.f32.gmra.mrb[6].mxu0 %vm675_vm3, %v763_v47  ;;  %v1165_v22 = vpop.xlane.xlu0 %1164  ;;  %v1176_v31 = vmul.f32 %v3609_v5, %v4348_v61 }
 0x433   : > { %3011 = vmatprep.mubr.msk.f32.mxu0 %vm675_vm3, %v1174_v59 }
 0x436   : > { %v1162_v38 = vpop.xlane.xlu0 %1161 }
 0x43a   : > { %v3485_v0 = vpop.permute.xlu0 %3484 }
 0x43b   : > { %v3487_v39 = vunpack.i.h.bf16 %v3485_v0  ;;  %v3486_v62 = vunpack.i.l.bf16 %v3485_v0 }
 0x43d   : > { %v3257_v52 = vpack.c.bf16 %v3487_v39, %v3486_v62 }
 0x457   : > { %v1147_v50 = vpop.xlane.xlu1 %1146 }
 0x458   : > { %3610 = vrcp.f32 %v1147_v50 }
 0x459   : > { %3612 = vrcp.f32 %v1156_v58 }
 0x45b   : > { %v1153_v4 = vpop.xlane.xlu1 %1152 }
 0x45c   : > { %3614 = vrcp.f32 %v1153_v4 }
 0x45d   : > { %3616 = vrcp.f32 %v1159_v49 }
 0x45e   : > { %3618 = vrcp.f32 %v1162_v38 }
 0x45f   : > { %v3490_v60 = vpop.permute.xlu1 %3489  ;;  %3620 = vrcp.f32 %v1165_v22 }
 0x460   : > { %v3492_v34 = vunpack.i.h.bf16 %v3490_v60  ;;  %v3491_v41 = vunpack.i.l.bf16 %v3490_v60 }
 0x462   : > { %v3611_v24 = vpop.eup %3610 }
 0x463   : > { %v1175_v42 = vmul.f32 %v3611_v24, %v4400_v17  ;;  %v3495_v27 = vpop.permute.xlu1 %3494  ;;  %v3613_v1 = vpop.eup %3612 }
 0x464   : > { %v1178_v61 = vmul.f32 %v3613_v1, %v4356_v14  ;;  %v3497_v9 = vunpack.i.h.bf16 %v3495_v27 }
 0x465   : > { %3012 = vmatmul.mubr.msk.f32.vlgmr.msra.gmra.mrb[8].mxu0 %vm675_vm3, %v1175_v42 }
 0x466   : > { %v3615_v2 = vpop.eup %3614  ;;  %3256 = vmatpush3.bf16.xpose.msk.msra.mxu0 %vm4145_vm2, %v3251_v35  ;;  %3014 = vmatprep.mubr.msk.f32.mxu0 %vm675_vm3, %v1176_v31 }
 0x467   : > { %3259 = vmatprep.subr.msk.bf16.mxu0 %vm4145_vm2, %v3257_v52  ;;  %v3500_v7 = vpop.permute.xlu1 %3499  ;;  %v1177_v20 = vmul.f32 %v3615_v2, %v4404_v21  ;;  %v3617_v17 = vpop.eup %3616  ;;  %v3263_v21 = vpack.c.bf16 %v3492_v34, %v3491_v41 }
 0x468   : > { %v3502_v8 = vunpack.i.h.bf16 %v3500_v7  ;;  %v3501_v10 = vunpack.i.l.bf16 %v3500_v7  ;;  %v3619_v63 = vpop.eup %3618  ;;  %v1179_v32 = vmul.f32 %v3617_v17, %v4352_v3  ;;  %v3496_v3 = vunpack.i.l.bf16 %v3495_v27 }
 0x469   : > { %3015 = vmatmul.mubr.msk.f32.gmra.mrb[10].mxu0 %vm675_vm3, %v1177_v20  ;;  %v3621_v11 = vpop.eup %3620  ;;  %v1180_v12 = vmul.f32 %v3619_v63, %v4376_v30 }
 0x46a   : > { %v3275_v55 = vpack.c.bf16 %v3502_v8, %v3501_v10  ;;  %3017 = vmatprep.mubr.msk.f32.mxu0 %vm675_vm3, %v1178_v61  ;;  %v1181_v14 = vmul.f32 %v3621_v11, %v4368_v25  ;;  %v3269_v30 = vpack.c.bf16 %v3497_v9, %v3496_v3 }
 0x46c   : > { %3276 = vmatprep.subr.bf16.mxu1 %v3275_v55 }
 0x46d   : > { %3018 = vmatmul.mubr.msk.f32.gmra.mrb[12].mxu0 %vm675_vm3, %v1179_v32  ;;  %3278 = vmatpush3.bf16.msra.mxu1 %v3275_v55 }
 0x46e   : > { %3262 = vmatpush3.bf16.xpose.msk.msra.mxu0 %vm4145_vm2, %v3257_v52  ;;  %3020 = vmatprep.mubr.msk.f32.mxu0 %vm675_vm3, %v1180_v12 }
 0x46f   : > { %3265 = vmatprep.subr.msk.bf16.mxu0 %vm4145_vm2, %v3263_v21 }
 0x471   : > { %3021 = vmatmul.mubr.msk.f32.gmra.mrb[14].mxu0 %vm675_vm3, %v1181_v14 }
 0x472   : > { %3039 = vmatprep.mubr.msk.f32.mxu0 %vm529_vm1, %v4364_v18 }
 0x476   : > { %3268 = vmatpush3.bf16.xpose.msk.msra.mxu0 %vm4145_vm2, %v3263_v21 }
 0x477   : > { %3271 = vmatprep.subr.msk.bf16.mxu0 %vm4145_vm2, %v3269_v30 }
 0x47e   : > { %3274 = vmatpush3.bf16.xpose.msk.msra.mxu0 %vm4145_vm2, %v3269_v30 }
 0x485   : > { %3040 = vmatmul.mubr.msk.f32.vlgmr.msra.gmra.mrb[16].mxu0 %vm529_vm1, %v4360_v15 }
 0x486   : > { %3042 = vmatprep.mubr.msk.f32.mxu0 %vm529_vm1, %v4392_v51 }
 0x489   : > { %3043 = vmatmul.mubr.msk.f32.gmra.mrb[18].mxu0 %vm529_vm1, %v4388_v40 }
 0x48a   : > { %3045 = vmatprep.mubr.msk.f32.mxu0 %vm529_vm1, %v4414_v28 }
 0x48d   : > { %3046 = vmatmul.mubr.msk.f32.gmra.mrb[20].mxu0 %vm529_vm1, %v4410_v23 }
 0x48e   : > { %3048 = vmatprep.mubr.msk.f32.mxu0 %vm529_vm1, %v4422_v36 }
 0x491   : > { %3049 = vmatmul.mubr.msk.f32.gmra.mrb[22].mxu0 %vm529_vm1, %v4418_v29 }
 0x4c8   : > { %v4507_v25 = vpop.f32.mrb[0].mxu0 }
 0x4c9   : > { %v4509_v6 = vpop.f32.mrb[1].mxu0 }
 0x4d0   : > { %v4511_v57 = vpop.f32.mrb[2].mxu0 }
 0x4d1   : > { %v4513_v19 = vpop.f32.mrb[3].mxu0 }
 0x4fc   : > { %v4515_v26 = vpop.f32.mrb[4].mxu0 }
 0x4fd   : > { %v4517_v43 = vpop.f32.mrb[5].mxu0 }
 0x505   : > { %v4519_v44 = vpop.f32.mrb[6].mxu0 }
 0x506   : > { %v4521_v35 = vpop.f32.mrb[7].mxu0 }
 0x538   : > { %v4523_v37 = vpop.f32.mrb[8].mxu0 }
 0x539   : > { %v4525_v53 = vpop.f32.mrb[9].mxu0 }
 0x53c   : > { %v4527_v45 = vpop.f32.mrb[10].mxu0 }
 0x53d   : > { %v4529_v46 = vpop.f32.mrb[11].mxu0 }
 0x540   : > { %v4531_v47 = vpop.f32.mrb[12].mxu0 }
 0x541   : > { %v4533_v59 = vpop.f32.mrb[13].mxu0 }
 0x544   : > { %v4535_v16 = vpop.f32.mrb[14].mxu0 }
 0x545   : > { %v4537_v49 = vpop.f32.mrb[15].mxu0 }
 0x558   : > { %v3041_v58 = vpop.f32.mrb[16].mxu0 }
 0x559   : > { %v1537_v22 = vmul.f32 0.35355338, %v3041_v58  ;;  %v1497_v50 = vpop.f32.mrb[17].mxu0 }
 0x55a   : > { %v1536_v38 = vmul.f32 0.35355338, %v1497_v50 }
 0x55b   : > { %v1547_v4 = vsel %vm675_vm3, %v1537_v22, -inf }
 0x55c   : > { %1548 = vmax.xlane.f32.xlu0 %v1547_v4  ;;  %v3044_v0 = vpop.f32.mrb[18].mxu0  ;;  %v1544_v60 = vsel %vm675_vm3, %v1536_v38, -inf }
 0x55d   : > { %v4541_v5 = vmul.f32 0.35355338, %v3044_v0  ;;  %1545 = vmax.xlane.f32.xlu1 %v1544_v60  ;;  %v1507_v39 = vpop.f32.mrb[19].mxu0 }
 0x55e   : > { %v1538_v62 = vmul.f32 0.35355338, %v1507_v39 }
 0x55f   : > { %v1553_v24 = vsel %vm675_vm3, %v4541_v5, -inf }
 0x560   : > { %1554 = vmax.xlane.f32.xlu0 %v1553_v24  ;;  %v3047_v42 = vpop.f32.mrb[20].mxu0  ;;  %v1550_v27 = vsel %vm675_vm3, %v1538_v62, -inf }
 0x561   : > { %v1541_v31 = vmul.f32 0.35355338, %v3047_v42  ;;  %1551 = vmax.xlane.f32.xlu1 %v1550_v27  ;;  %v1517_v1 = vpop.f32.mrb[21].mxu0 }
 0x562   : > { %v1540_v52 = vmul.f32 0.35355338, %v1517_v1 }
 0x563   : > { %v1559_v2 = vsel %vm675_vm3, %v1541_v31, -inf }
 0x564   : > { %1560 = vmax.xlane.f32.xlu0 %v1559_v2  ;;  %v3050_v7 = vpop.f32.mrb[22].mxu0  ;;  %v1556_v20 = vsel %vm675_vm3, %v1540_v52, -inf }
 0x565   : > { %v1543_v17 = vmul.f32 0.35355338, %v3050_v7  ;;  %1557 = vmax.xlane.f32.xlu1 %v1556_v20  ;;  %v1527_v8 = vpop.f32.mrb[23].mxu0 }
 0x566   : > { %v4553_v61 = vmul.f32 0.35355338, %v1527_v8 }
 0x567   : > { %v1565_v10 = vsel %vm675_vm3, %v1543_v17, -inf }
 0x568   : > { %1566 = vmax.xlane.f32.xlu0 %v1565_v10  ;;  %v1562_v63 = vsel %vm675_vm3, %v4553_v61, -inf }
 0x576   : > { %3509 = vrot.lane.b32.xlu1 %v4426_v13, %s3822_s11 }
 0x57e   : > { %3504 = vrot.lane.b32.xlu0 %v4396_v56, %s3822_s11 }
 0x59a   : > { %1563 = vmax.xlane.f32.xlu1 %v1562_v63 }
 0x5ab   : > { %3514 = vrot.lane.b32.xlu1 %v4432_v48, %s3822_s11 }
 0x5e9   : > { %v1549_v34 = vpop.xlane.xlu0 %1548 }
 0x5ea   : > { %v1569_v41 = vsub.f32 %v1537_v22, %v1549_v34  ;;  %v1546_v55 = vpop.xlane.xlu1 %1545 }
 0x5eb   : > { %v1568_v32 = vsub.f32 %v1536_v38, %v1546_v55 }
 0x5ec   : > { %v1578_v11 = vmul.f32 1.442695, %v1569_v41 }
 0x5ed   : > { %v1576_v12 = vmul.f32 1.442695, %v1568_v32  ;;  %v1555_v21 = vpop.xlane.xlu0 %1554 }
 0x5ee   : > { %3622 = vpow2.f32 %v1578_v11  ;;  %v1552_v14 = vpop.xlane.xlu1 %1551 }
 0x5ef   : > { %3624 = vpow2.f32 %v1576_v12  ;;  %v1570_v9 = vsub.f32 %v1538_v62, %v1552_v14  ;;  %v1571_v14 = vsub.f32 %v4541_v5, %v1555_v21 }
 0x5f1   : > { %v1580_v3 = vmul.f32 1.442695, %v1570_v9  ;;  %v1561_v30 = vpop.xlane.xlu0 %1560  ;;  %v1582_v9 = vmul.f32 1.442695, %v1571_v14 }
 0x5f2   : > { %v1573_v58 = vsub.f32 %v1541_v31, %v1561_v30  ;;  %v1558_v50 = vpop.xlane.xlu1 %1557 }
 0x5f3   : > { %3626 = vpow2.f32 %v1580_v3  ;;  %v1572_v4 = vsub.f32 %v1540_v52, %v1558_v50 }
 0x5f4   : > { %v1586_v0 = vmul.f32 1.442695, %v1573_v58 }
 0x5f5   : > { %v1584_v60 = vmul.f32 1.442695, %v1572_v4  ;;  %v1567_v39 = vpop.xlane.xlu0 %1566 }
 0x5f6   : > { %3628 = vpow2.f32 %v1586_v0  ;;  %v1575_v22 = vsub.f32 %v1543_v17, %v1567_v39  ;;  %v3510_v24 = vpop.permute.xlu1 %3509 }
 0x5f7   : > { %3630 = vpow2.f32 %v1584_v60  ;;  %v3512_v1 = vunpack.i.h.bf16 %v3510_v24  ;;  %v3511_v2 = vunpack.i.l.bf16 %v3510_v24 }
 0x5f8   : > { %v4559_v38 = vpop.eup %3622  ;;  %v1590_v27 = vmul.f32 1.442695, %v1575_v22 }
 0x5f9   : > { %v4561_v42 = vpop.eup %3624  ;;  %v3505_v62 = vpop.permute.xlu0 %3504  ;;  %v1595_v31 = vsel %vm675_vm3, %v4559_v38, 0.0  ;;  %v3283_v10 = vpack.c.bf16 %v3512_v1, %v3511_v2 }
 0x5fa   : > { %v3507_v7 = vunpack.i.h.bf16 %v3505_v62  ;;  %v3506_v52 = vunpack.i.l.bf16 %v3505_v62  ;;  %1596 = vadd.xlane.f32.xlu0 %v1595_v31  ;;  %v1592_v20 = vsel %vm675_vm3, %v4561_v42, 0.0  ;;  %3632 = vpow2.f32 %v1590_v27 }
 0x5fb   : > { %1593 = vadd.xlane.f32.xlu1 %v1592_v20  ;;  %3634 = vpow2.f32 %v1582_v9 }
 0x5fc   : > { %v3279_v17 = vpack.c.bf16 %v3507_v7, %v3506_v52 }
 0x5fd   : > { %v4567_v8 = vpop.eup %3626 }
 0x5fe   : > { %3280 = vmatprep.subr.bf16.mxu1 %v3279_v17  ;;  %v1598_v63 = vsel %vm675_vm3, %v4567_v8, 0.0 }
 0x5ff   : > { %1599 = vadd.xlane.f32.xlu0 %v1598_v63  ;;  %3282 = vmatpush3.bf16.msra.mxu1 %v3279_v17 }
 0x600   : > { %v4571_v34 = vpop.eup %3628  ;;  %3284 = vmatprep.subr.bf16.mxu1 %v3283_v10 }
 0x601   : > { %v1607_v41 = vsel %vm675_vm3, %v4571_v34, 0.0  ;;  %v4575_v55 = vpop.eup %3630 }
 0x602   : > { %v1604_v32 = vsel %vm675_vm3, %v4575_v55, 0.0 }
 0x603   : > { %1608 = vadd.xlane.f32.xlu0 %v1607_v41  ;;  %3286 = vmatpush3.bf16.msra.mxu1 %v3283_v10 }
 0x604   : > { %v4579_v11 = vpop.eup %3632 }
 0x605   : > { %v1613_v12 = vsel %vm675_vm3, %v4579_v11, 0.0  ;;  %v3635_v4 = vpop.eup %3634 }
 0x606   : > { %v1601_v22 = vsel %vm675_vm3, %v3635_v4, 0.0 }
 0x607   : > { %1605 = vadd.xlane.f32.xlu0 %v1604_v32 }
 0x60b   : > { %1614 = vadd.xlane.f32.xlu0 %v1613_v12 }
 0x60c   : > { %3519 = vrot.lane.b32.xlu1 %v4374_v33, %s3820_s5 }
 0x627   : > { %v1564_v3 = vpop.xlane.xlu1 %1563 }
 0x628   : > { %v1574_v30 = vsub.f32 %v4553_v61, %v1564_v3 }
 0x62a   : > { %v1588_v58 = vmul.f32 1.442695, %v1574_v30 }
 0x62b   : > { %v3515_v50 = vpop.permute.xlu1 %3514 }
 0x62c   : > { %3636 = vpow2.f32 %v1588_v58  ;;  %v3517_v0 = vunpack.i.h.bf16 %v3515_v50  ;;  %v3516_v60 = vunpack.i.l.bf16 %v3515_v50 }
 0x62e   : > { %v3287_v39 = vpack.c.bf16 %v3517_v0, %v3516_v60 }
 0x630   : > { %1602 = vadd.xlane.f32.xlu1 %v1601_v22  ;;  %3288 = vmatprep.subr.bf16.mxu1 %v3287_v39 }
 0x631   : > { %3290 = vmatpush3.bf16.msra.mxu1 %v3287_v39 }
 0x636   : > { %v4588_v24 = vpop.eup %3636 }
 0x637   : > { %v1610_v5 = vsel %vm675_vm3, %v4588_v24, 0.0 }
 0x638   : > { %1611 = vadd.xlane.f32.xlu0 %v1610_v5 }
 0x641   : > { %3529 = vrot.lane.b32.xlu1 %v4426_v13, %s3820_s5 }
 0x645   : > { %3534 = vrot.lane.b32.xlu1 %v4432_v48, %s3820_s5 }
 0x649   : > { %1785 = vrot.lane.b32.xlu1 %v4364_v18, %s3821_s15 }
 0x64d   : > { %1787 = vrot.lane.b32.xlu1 %v4360_v15, %s3821_s15 }
 0x64e   : > { %3524 = vrot.lane.b32.xlu0 %v4396_v56, %s3820_s5 }
 0x651   : > { %1791 = vrot.lane.b32.xlu1 %v4388_v40, %s3821_s15 }
 0x652   : > { %1789 = vrot.lane.b32.xlu0 %v4392_v51, %s3821_s15 }
 0x655   : > { %1795 = vrot.lane.b32.xlu1 %v4410_v23, %s3821_s15 }
 0x656   : > { %1793 = vrot.lane.b32.xlu0 %v4414_v28, %s3821_s15 }
 0x659   : > { %1799 = vrot.lane.b32.xlu1 %v4418_v29, %s3821_s15 }
 0x65a   : > { %1797 = vrot.lane.b32.xlu0 %v4422_v36, %s3821_s15 }
 0x687   : > { %v1597_v15 = vpop.xlane.xlu0 %1596 }
 0x688   : > { %3638 = vrcp.f32 %v1597_v15  ;;  %v1594_v18 = vpop.xlane.xlu1 %1593 }
 0x689   : > { %3640 = vrcp.f32 %v1594_v18 }
 0x68c   : > { %v1600_v40 = vpop.xlane.xlu0 %1599  ;;  %v3520_v61 = vpop.permute.xlu1 %3519 }
 0x68d   : > { %3642 = vrcp.f32 %v1600_v40  ;;  %v3522_v51 = vunpack.i.h.bf16 %v3520_v61  ;;  %v3521_v21 = vunpack.i.l.bf16 %v3520_v61 }
 0x68f   : > { %v3291_v27 = vpack.c.bf16 %v3522_v51, %v3521_v21 }
 0x690   : > { %v1609_v31 = vpop.xlane.xlu0 %1608 }
 0x691   : > { %3293 = vmatprep.subr.msk.bf16.mxu1 %vm4145_vm2, %v3291_v27 }
 0x692   : > { %v3639_v23 = vpop.eup %3638 }
 0x693   : > { %v3641_v28 = vpop.eup %3640  ;;  %v1625_v1 = vmul.f32 %v3639_v23, %v4559_v38 }
 0x694   : > { %v1624_v29 = vmul.f32 %v3641_v28, %v4561_v42  ;;  %v1606_v2 = vpop.xlane.xlu0 %1605 }
 0x695   : > { %3644 = vrcp.f32 %v1606_v2 }
 0x696   : > { %3067 = vmatprep.mubr.msk.f32.mxu1 %vm675_vm3, %v1624_v29 }
 0x697   : > { %v3643_v36 = vpop.eup %3642  ;;  %3068 = vmatmul.mubr.msk.f32.vlgmr.msra.gmra.mrb[32].mxu1 %vm675_vm3, %v1625_v1 }
 0x698   : > { %3296 = vmatpush3.bf16.xpose.msk.msra.mxu1 %vm4145_vm2, %v3291_v27  ;;  %v1626_v62 = vmul.f32 %v3643_v36, %v4567_v8  ;;  %v1615_v42 = vpop.xlane.xlu0 %1614 }
 0x69a   : > { %3070 = vmatprep.mubr.msk.f32.mxu1 %vm675_vm3, %v1626_v62 }
 0x69f   : > { %v3645_v52 = vpop.eup %3644 }
 0x6a0   : > { %v1628_v12 = vmul.f32 %v3645_v52, %v4575_v55 }
 0x6bd   : > { %v1603_v7 = vpop.xlane.xlu1 %1602 }
 0x6be   : > { %3646 = vrcp.f32 %v1603_v7 }
 0x6bf   : > { %3648 = vrcp.f32 %v1609_v31 }
 0x6c0   : > { %3650 = vrcp.f32 %v1615_v42 }
 0x6c1   : > { %v3530_v17 = vpop.permute.xlu1 %3529 }
 0x6c2   : > { %v3532_v14 = vunpack.i.h.bf16 %v3530_v17  ;;  %v3531_v9 = vunpack.i.l.bf16 %v3530_v17 }
 0x6c5   : > { %v1612_v38 = vpop.xlane.xlu0 %1611  ;;  %v3535_v58 = vpop.permute.xlu1 %3534 }
 0x6c6   : > { %3652 = vrcp.f32 %v1612_v38  ;;  %v3536_v39 = vunpack.i.l.bf16 %v3535_v58 }
 0x6c8   : > { %v3647_v20 = vpop.eup %3646 }
 0x6c9   : > { %v3525_v10 = vpop.permute.xlu0 %3524  ;;  %v1627_v63 = vmul.f32 %v3647_v20, %v3635_v4  ;;  %v3649_v41 = vpop.eup %3648  ;;  %v3303_v4 = vpack.c.bf16 %v3532_v14, %v3531_v9 }
 0x6ca   : > { %v3527_v32 = vunpack.i.h.bf16 %v3525_v10  ;;  %v3526_v8 = vunpack.i.l.bf16 %v3525_v10  ;;  %v1629_v30 = vmul.f32 %v3649_v41, %v4571_v34  ;;  %v3651_v50 = vpop.eup %3650  ;;  %v3537_v34 = vunpack.i.h.bf16 %v3535_v58  ;;  %v1786_v22 = vpop.permute.xlu1 %1785 }
 0x6cb   : > { %3071 = vmatmul.mubr.msk.f32.gmra.mrb[34].mxu1 %vm675_vm3, %v1627_v63  ;;  %v1631_v60 = vmul.f32 %v3651_v50, %v4579_v11 }
 0x6cc   : > { %v3297_v3 = vpack.c.bf16 %v3527_v32, %v3526_v8  ;;  %3073 = vmatprep.mubr.msk.f32.mxu1 %vm675_vm3, %v1628_v12  ;;  %v3309_v5 = vpack.c.bf16 %v3537_v34, %v3536_v39 }
 0x6cd   : > { %v1790_v11 = vpop.permute.xlu0 %1789 }
 0x6ce   : > { %3299 = vmatprep.subr.msk.bf16.mxu1 %vm4145_vm2, %v3297_v3  ;;  %v1788_v15 = vpop.permute.xlu1 %1787 }
 0x6cf   : > { %3074 = vmatmul.mubr.msk.f32.gmra.mrb[36].mxu1 %vm675_vm3, %v1629_v30 }
 0x6d0   : > { %v3653_v0 = vpop.eup %3652  ;;  %3302 = vmatpush3.bf16.xpose.msk.msra.mxu1 %vm4145_vm2, %v3297_v3 }
 0x6d1   : > { %3305 = vmatprep.subr.msk.bf16.mxu1 %vm4145_vm2, %v3303_v4  ;;  %v1630_v55 = vmul.f32 %v3653_v0, %v4588_v24  ;;  %v1794_v18 = vpop.permute.xlu0 %1793 }
 0x6d2   : > { %v1792_v24 = vpop.permute.xlu1 %1791 }
 0x6d3   : > { %3076 = vmatprep.mubr.msk.f32.mxu1 %vm675_vm3, %v1630_v55 }
 0x6d4   : > { %3077 = vmatmul.mubr.msk.f32.gmra.mrb[38].mxu1 %vm675_vm3, %v1631_v60 }
 0x6d5   : > { %3095 = vmatprep.mubr.msk.f32.mxu1 %vm529_vm1, %v1786_v22  ;;  %v1798_v61 = vpop.permute.xlu0 %1797 }
 0x6d6   : > { %v1796_v40 = vpop.permute.xlu1 %1795 }
 0x6d8   : > { %3308 = vmatpush3.bf16.xpose.msk.msra.mxu1 %vm4145_vm2, %v3303_v4 }
 0x6d9   : > { %3311 = vmatprep.subr.msk.bf16.mxu1 %vm4145_vm2, %v3309_v5 }
 0x6da   : > { %v1800_v51 = vpop.permute.xlu1 %1799 }
 0x6e0   : > { %3314 = vmatpush3.bf16.xpose.msk.msra.mxu1 %vm4145_vm2, %v3309_v5 }
 0x6e7   : > { %3096 = vmatmul.mubr.msk.f32.vlgmr.msra.gmra.mrb[40].mxu1 %vm529_vm1, %v1788_v15 }
 0x6e8   : > { %3098 = vmatprep.mubr.msk.f32.mxu1 %vm529_vm1, %v1790_v11 }
 0x6eb   : > { %3099 = vmatmul.mubr.msk.f32.gmra.mrb[42].mxu1 %vm529_vm1, %v1792_v24 }
 0x6ec   : > { %3101 = vmatprep.mubr.msk.f32.mxu1 %vm529_vm1, %v1794_v18 }
 0x6ef   : > { %3102 = vmatmul.mubr.msk.f32.gmra.mrb[44].mxu1 %vm529_vm1, %v1796_v40 }
 0x6f0   : > { %3104 = vmatprep.mubr.msk.f32.mxu1 %vm529_vm1, %v1798_v61 }
 0x6f3   : > { %3105 = vmatmul.mubr.msk.f32.gmra.mrb[46].mxu1 %vm529_vm1, %v1800_v51 }
 0x76a   : > { %v4653_v54 = vpop.f32.mrb[32].mxu1 }
 0x76b   : > { %v4655_v21 = vpop.f32.mrb[33].mxu1 }
 0x79e   : > { %v4657_v27 = vpop.f32.mrb[34].mxu1 }
 0x79f   : > { %v4659_v23 = vpop.f32.mrb[35].mxu1 }
 0x7a2   : > { %v4661_v28 = vpop.f32.mrb[36].mxu1 }
 0x7a3   : > { %v4663_v29 = vpop.f32.mrb[37].mxu1 }
 0x7a7   : > { %v4665_v1 = vpop.f32.mrb[38].mxu1 }
 0x7a8   : > { %v4667_v36 = vpop.f32.mrb[39].mxu1 }
 0x7ba   : > { %v3097_v62 = vpop.f32.mrb[40].mxu1 }
 0x7bb   : > { %v1955_v31 = vmul.f32 0.35355338, %v3097_v62  ;;  %v1915_v2 = vpop.f32.mrb[41].mxu1 }
 0x7bc   : > { %v1954_v7 = vmul.f32 0.35355338, %v1915_v2 }
 0x7bd   : > { %v1965_v42 = vsel %vm675_vm3, %v1955_v31, -inf }
 0x7be   : > { %1966 = vmax.xlane.f32.xlu1 %v1965_v42  ;;  %v3100_v38 = vpop.f32.mrb[42].mxu1  ;;  %v1962_v52 = vsel %vm675_vm3, %v1954_v7, -inf }
 0x7bf   : > { %1963 = vmax.xlane.f32.xlu0 %v1962_v52  ;;  %v1925_v20 = vpop.f32.mrb[43].mxu1  ;;  %v1957_v10 = vmul.f32 0.35355338, %v3100_v38 }
 0x7c0   : > { %v1956_v17 = vmul.f32 0.35355338, %v1925_v20 }
 0x7c1   : > { %v1971_v9 = vsel %vm675_vm3, %v1957_v10, -inf }
 0x7c2   : > { %v3103_v63 = vpop.f32.mrb[44].mxu1  ;;  %v1968_v41 = vsel %vm675_vm3, %v1956_v17, -inf }
 0x7c3   : > { %1969 = vmax.xlane.f32.xlu0 %v1968_v41  ;;  %v1935_v32 = vpop.f32.mrb[45].mxu1  ;;  %v1959_v12 = vmul.f32 0.35355338, %v3103_v63 }
 0x7c4   : > { %v1958_v8 = vmul.f32 0.35355338, %v1935_v32 }
 0x7c5   : > { %v1977_v4 = vsel %vm675_vm3, %v1959_v12, -inf }
 0x7c6   : > { %v3106_v14 = vpop.f32.mrb[46].mxu1  ;;  %v1974_v3 = vsel %vm675_vm3, %v1958_v8, -inf }
 0x7c7   : > { %1972 = vmax.xlane.f32.xlu0 %v1971_v9  ;;  %1975 = vmax.xlane.f32.xlu1 %v1974_v3  ;;  %v1945_v30 = vpop.f32.mrb[47].mxu1  ;;  %v1961_v50 = vmul.f32 0.35355338, %v3106_v14 }
 0x7c8   : > { %v1960_v58 = vmul.f32 0.35355338, %v1945_v30 }
 0x7c9   : > { %v1983_v55 = vsel %vm675_vm3, %v1961_v50, -inf }
 0x7ca   : > { %v1980_v0 = vsel %vm675_vm3, %v1960_v58, -inf }
 0x7cb   : > { %1978 = vmax.xlane.f32.xlu0 %v1977_v4  ;;  %1981 = vmax.xlane.f32.xlu1 %v1980_v0 }
 0x7cf   : > { %1984 = vmax.xlane.f32.xlu0 %v1983_v55 }
 0x7dc   : > { %3539 = vrot.lane.b32.xlu1 %v4374_v33, %s3823_s18 }
 0x84b   : > { %v1967_v60 = vpop.xlane.xlu1 %1966 }
 0x84c   : > { %v1987_v34 = vsub.f32 %v1955_v31, %v1967_v60  ;;  %v1964_v39 = vpop.xlane.xlu0 %1963 }
 0x84d   : > { %v1986_v22 = vsub.f32 %v1954_v7, %v1964_v39 }
 0x84e   : > { %v1996_v5 = vmul.f32 1.442695, %v1987_v34 }
 0x84f   : > { %v1994_v15 = vmul.f32 1.442695, %v1986_v22 }
 0x850   : > { %3654 = vpow2.f32 %v1996_v5  ;;  %v1970_v11 = vpop.xlane.xlu0 %1969 }
 0x851   : > { %3656 = vpow2.f32 %v1994_v15  ;;  %v1988_v24 = vsub.f32 %v1956_v17, %v1970_v11 }
 0x853   : > { %v1998_v18 = vmul.f32 1.442695, %v1988_v24 }
 0x854   : > { %v1973_v40 = vpop.xlane.xlu0 %1972  ;;  %v1976_v61 = vpop.xlane.xlu1 %1975 }
 0x855   : > { %3658 = vpow2.f32 %v1998_v18  ;;  %v1989_v51 = vsub.f32 %v1957_v10, %v1973_v40  ;;  %v1990_v62 = vsub.f32 %v1958_v8, %v1976_v61 }
 0x857   : > { %v2000_v2 = vmul.f32 1.442695, %v1989_v51  ;;  %v2002_v42 = vmul.f32 1.442695, %v1990_v62 }
 0x858   : > { %v1979_v38 = vpop.xlane.xlu0 %1978  ;;  %v1982_v33 = vpop.xlane.xlu1 %1981 }
 0x859   : > { %3660 = vpow2.f32 %v2000_v2  ;;  %v1991_v31 = vsub.f32 %v1959_v12, %v1979_v38  ;;  %v1992_v63 = vsub.f32 %v1960_v58, %v1982_v33 }
 0x85a   : > { %v4679_v52 = vpop.eup %3654  ;;  %3662 = vpow2.f32 %v2002_v42 }
 0x85b   : > { %v3657_v7 = vpop.eup %3656  ;;  %v2004_v20 = vmul.f32 1.442695, %v1991_v31  ;;  %v2013_v17 = vsel %vm675_vm3, %v4679_v52, 0.0  ;;  %v2006_v3 = vmul.f32 1.442695, %v1992_v63  ;;  %v2243_v31 = vld [vmem:[%s243_s21] sm:$0xff] }
 0x85c   : > { %2014 = vadd.xlane.f32.xlu0 %v2013_v17  ;;  %v1985_v41 = vpop.xlane.xlu0 %1984  ;;  %v3540_v32 = vpop.permute.xlu1 %3539  ;;  %v2010_v10 = vsel %vm675_vm3, %v3657_v7, 0.0 }
 0x85d   : > { %3664 = vpow2.f32 %v2004_v20  ;;  %v1993_v8 = vsub.f32 %v1961_v50, %v1985_v41  ;;  %v3542_v14 = vunpack.i.h.bf16 %v3540_v32  ;;  %v3541_v9 = vunpack.i.l.bf16 %v3540_v32  ;;  %2011 = vadd.xlane.f32.xlu1 %v2010_v10 }
 0x85f   : > { %v4684_v12 = vpop.eup %3658  ;;  %v2008_v30 = vmul.f32 1.442695, %v1993_v8  ;;  %v3315_v4 = vpack.c.bf16 %v3542_v14, %v3541_v9 }
 0x860   : > { %v2016_v58 = vsel %vm675_vm3, %v4684_v12, 0.0 }
 0x861   : > { %3666 = vpow2.f32 %v2008_v30  ;;  %2017 = vadd.xlane.f32.xlu1 %v2016_v58  ;;  %3316 = vmatprep.subr.bf16.mxu0 %v3315_v4 }
 0x862   : > { %3318 = vmatpush3.bf16.msra.mxu0 %v3315_v4  ;;  %3668 = vpow2.f32 %v2006_v3 }
 0x863   : > { %v4688_v0 = vpop.eup %3660 }
 0x864   : > { %v4690_v55 = vpop.eup %3662  ;;  %v2019_v50 = vsel %vm675_vm3, %v4688_v0, 0.0 }
 0x865   : > { %2020 = vadd.xlane.f32.xlu0 %v2019_v50  ;;  %v2022_v60 = vsel %vm675_vm3, %v4690_v55, 0.0 }
 0x866   : > { %2023 = vadd.xlane.f32.xlu1 %v2022_v60 }
 0x867   : > { %v4696_v34 = vpop.eup %3664 }
 0x868   : > { %v2025_v39 = vsel %vm675_vm3, %v4696_v34, 0.0 }
 0x869   : > { %2026 = vadd.xlane.f32.xlu0 %v2025_v39 }
 0x86b   : > { %v4700_v22 = vpop.eup %3666 }
 0x86c   : > { %v2031_v5 = vsel %vm675_vm3, %v4700_v22, 0.0  ;;  %v4704_v15 = vpop.eup %3668 }
 0x86d   : > { %2032 = vadd.xlane.f32.xlu0 %v2031_v5  ;;  %v2028_v11 = vsel %vm675_vm3, %v4704_v15, 0.0 }
 0x871   : > { %2029 = vadd.xlane.f32.xlu0 %v2028_v11 }
 0x877   : > { %3549 = vrot.lane.b32.xlu1 %v4426_v13, %s3823_s18 }
 0x87b   : > { %3554 = vrot.lane.b32.xlu1 %v4432_v48, %s3823_s18 }
 0x87f   : > { %1343 = vrot.lane.b32.xlu1 %v4525_v53, %s3824_s14 }
 0x883   : > { %1345 = vrot.lane.b32.xlu1 %v4523_v37, %s3824_s14 }
 0x887   : > { %1349 = vrot.lane.b32.xlu1 %v4527_v45, %s3824_s14  ;;  %3544 = vrot.lane.b32.xlu0 %v4396_v56, %s3823_s18 }
 0x88b   : > { %1353 = vrot.lane.b32.xlu1 %v4531_v47, %s3824_s14  ;;  %1347 = vrot.lane.b32.xlu0 %v4529_v46, %s3824_s14 }
 0x88f   : > { %1357 = vrot.lane.b32.xlu1 %v4535_v16, %s3824_s14  ;;  %1351 = vrot.lane.b32.xlu0 %v4533_v59, %s3824_s14 }
 0x893   : > { %1355 = vrot.lane.b32.xlu0 %v4537_v49, %s3824_s14 }
 0x8e9   : > { %v2015_v48 = vpop.xlane.xlu0 %2014 }
 0x8ea   : > { %v2012_v13 = vpop.xlane.xlu1 %2011 }
 0x8eb   : > { %3670 = vrcp.f32 %v2012_v13 }
 0x8ec   : > { %3672 = vrcp.f32 %v2015_v48 }
 0x8ee   : > { %v2018_v37 = vpop.xlane.xlu1 %2017 }
 0x8ef   : > { %3674 = vrcp.f32 %v2018_v37 }
 0x8f2   : > { %v2021_v56 = vpop.xlane.xlu0 %2020 }
 0x8f3   : > { %v2024_v24 = vpop.xlane.xlu1 %2023  ;;  %3676 = vrcp.f32 %v2021_v56 }
 0x8f4   : > { %3678 = vrcp.f32 %v2024_v24 }
 0x8f5   : > { %v3671_v53 = vpop.eup %3670 }
 0x8f6   : > { %v2027_v45 = vpop.xlane.xlu0 %2026  ;;  %v2042_v47 = vmul.f32 %v3671_v53, %v3657_v7  ;;  %v2244_v7 = vld [vmem:[%s243_s21 + $0x8] sm:$0xff]  ;;  %v3673_v17 = vpop.eup %3672 }
 0x8f7   : > { %v3550_v16 = vpop.permute.xlu1 %3549  ;;  %3680 = vrcp.f32 %v2027_v45  ;;  %v3331_v63 = vpack.c.bf16 %v2244_v7, %v2243_v31  ;;  %v2043_v32 = vmul.f32 %v3673_v17, %v4679_v52 }
 0x8f8   : > { %3123 = vmatprep.mubr.msk.f32.mxu0 %vm675_vm3, %v2042_v47  ;;  %v3552_v59 = vunpack.i.h.bf16 %v3550_v16  ;;  %v3551_v61 = vunpack.i.l.bf16 %v3550_v16 }
 0x8f9   : > { %v3675_v41 = vpop.eup %3674 }
 0x8fa   : > { %v2033_v46 = vpop.xlane.xlu0 %2032  ;;  %v3323_v42 = vpack.c.bf16 %v3552_v59, %v3551_v61  ;;  %v2044_v8 = vmul.f32 %v3675_v41, %v4684_v12 }
 0x8fb   : > { %v3555_v62 = vpop.permute.xlu1 %3554 }
 0x8fc   : > { %v3557_v38 = vunpack.i.h.bf16 %v3555_v62  ;;  %v3556_v33 = vunpack.i.l.bf16 %v3555_v62 }
 0x8fd   : > { %v3677_v10 = vpop.eup %3676 }
 0x8fe   : > { %v2030_v18 = vpop.xlane.xlu0 %2029  ;;  %v3327_v20 = vpack.c.bf16 %v3557_v38, %v3556_v33  ;;  %v3679_v14 = vpop.eup %3678  ;;  %v2045_v3 = vmul.f32 %v3677_v10, %v4688_v0 }
 0x8ff   : > { %3682 = vrcp.f32 %v2030_v18  ;;  %v1344_v9 = vpop.permute.xlu1 %1343  ;;  %v2046_v4 = vmul.f32 %v3679_v14, %v4690_v55 }
 0x900   : > { %3684 = vrcp.f32 %v2033_v46  ;;  %v1367_v55 = vsel %vm529_vm1, %v4509_v6, %v1344_v9 }
 0x901   : > { %v3681_v30 = vpop.eup %3680 }
 0x902   : > { %v3545_v40 = vpop.permute.xlu0 %3544  ;;  %v2047_v12 = vmul.f32 %v3681_v30, %v4696_v34 }
 0x903   : > { %v3547_v51 = vunpack.i.h.bf16 %v3545_v40  ;;  %v3546_v49 = vunpack.i.l.bf16 %v3545_v40  ;;  %v1346_v52 = vpop.permute.xlu1 %1345 }
 0x904   : > { %v1368_v34 = vsel %vm529_vm1, %v4507_v25, %v1346_v52 }
 0x905   : > { %v3319_v2 = vpack.c.bf16 %v3547_v51, %v3546_v49 }
 0x906   : > { %v1348_v39 = vpop.permute.xlu0 %1347 }
 0x907   : > { %3320 = vmatprep.subr.bf16.mxu0 %v3319_v2  ;;  %v1350_v5 = vpop.permute.xlu1 %1349  ;;  %v1369_v11 = vsel %vm529_vm1, %v4513_v19, %v1348_v39 }
 0x908   : > { %3322 = vmatpush3.bf16.msra.mxu0 %v3319_v2  ;;  %v1370_v6 = vsel %vm529_vm1, %v4511_v57, %v1350_v5 }
 0x909   : > { %3324 = vmatprep.subr.bf16.mxu0 %v3323_v42  ;;  %v3683_v58 = vpop.eup %3682 }
 0x90a   : > { %v3685_v50 = vpop.eup %3684  ;;  %v2048_v60 = vmul.f32 %v3683_v58, %v4704_v15  ;;  %v1352_v15 = vpop.permute.xlu0 %1351 }
 0x90b   : > { %v2049_v0 = vmul.f32 %v3685_v50, %v4700_v22  ;;  %v1354_v22 = vpop.permute.xlu1 %1353  ;;  %v1371_v13 = vsel %vm529_vm1, %v4517_v43, %v1352_v15 }
 0x90c   : > { %3326 = vmatpush3.bf16.msra.mxu0 %v3323_v42  ;;  %v1372_v25 = vsel %vm529_vm1, %v4515_v26, %v1354_v22 }
 0x90d   : > { %3328 = vmatprep.subr.bf16.mxu0 %v3327_v20 }
 0x90e   : > { %v1356_v48 = vpop.permute.xlu0 %1355 }
 0x90f   : > { %v1373_v19 = vsel %vm529_vm1, %v4521_v35, %v1356_v48  ;;  %v1358_v37 = vpop.permute.xlu1 %1357 }
 0x910   : > { %3330 = vmatpush3.bf16.msra.mxu0 %v3327_v20  ;;  %v1374_v57 = vsel %vm529_vm1, %v4519_v44, %v1358_v37 }
 0x911   : > { %3332 = vmatprep.subr.bf16.mxu0 %v3331_v63 }
 0x913   : > { %3124 = vmatmul.mubr.msk.f32.vlgmr.msra.gmra.mrb[24].mxu0 %vm675_vm3, %v2043_v32 }
 0x914   : > { %3126 = vmatprep.mubr.msk.f32.mxu0 %vm675_vm3, %v2044_v8  ;;  %3334 = vmatpush3.bf16.msra.mxu0 %v3331_v63 }
 0x917   : > { %3127 = vmatmul.mubr.msk.f32.gmra.mrb[26].mxu0 %vm675_vm3, %v2045_v3 }
 0x918   : > { %3129 = vmatprep.mubr.msk.f32.mxu0 %vm675_vm3, %v2046_v4 }
 0x91b   : > { %3130 = vmatmul.mubr.msk.f32.gmra.mrb[28].mxu0 %vm675_vm3, %v2047_v12 }
 0x91c   : > { %3132 = vmatprep.mubr.msk.f32.mxu0 %vm675_vm3, %v2048_v60 }
 0x91f   : > { %3133 = vmatmul.mubr.msk.f32.gmra.mrb[30].mxu0 %vm675_vm3, %v2049_v0 }
 0x920   : > { %3139 = vmatprep.mubr.msk.f32.mxu0 %vm2245_vm4, %v1367_v55 }
 0x923   : > { %3140 = vmatmul.mubr.msk.f32.vlgmr.msra.gmra.mrb[32].mxu0 %vm2245_vm4, %v1368_v34 }
 0x924   : > { %3142 = vmatprep.mubr.msk.f32.mxu0 %vm2245_vm4, %v1369_v11 }
 0x927   : > { %3143 = vmatmul.mubr.msk.f32.gmra.mrb[34].mxu0 %vm2245_vm4, %v1370_v6 }
 0x928   : > { %3145 = vmatprep.mubr.msk.f32.mxu0 %vm2245_vm4, %v1371_v13 }
 0x92b   : > { %3146 = vmatmul.mubr.msk.f32.gmra.mrb[36].mxu0 %vm2245_vm4, %v1372_v25 }
 0x92c   : > { %3148 = vmatprep.mubr.msk.f32.mxu0 %vm2245_vm4, %v1373_v19 }
 0x92f   : > { %3149 = vmatmul.mubr.msk.f32.gmra.mrb[38].mxu0 %vm2245_vm4, %v1374_v57 }
 0x9e6   : > { %v3125_v43 = vpop.f32.mrb[24].mxu0 }
 0x9e7   : > { %2213 = vrot.lane.b32.xlu1 %v3125_v43, %s3824_s14  ;;  %v2164_v56 = vpop.f32.mrb[25].mxu0 }
 0x9e8   : > { %2211 = vrot.lane.b32.xlu0 %v2164_v56, %s3824_s14 }
 0x9ea   : > { %v3128_v26 = vpop.f32.mrb[26].mxu0 }
 0x9eb   : > { %2217 = vrot.lane.b32.xlu1 %v3128_v26, %s3824_s14  ;;  %v2174_v35 = vpop.f32.mrb[27].mxu0 }
 0x9ec   : > { %2215 = vrot.lane.b32.xlu0 %v2174_v35, %s3824_s14 }
 0x9ee   : > { %v3131_v53 = vpop.f32.mrb[28].mxu0 }
 0x9ef   : > { %2221 = vrot.lane.b32.xlu1 %v3131_v53, %s3824_s14  ;;  %v2184_v45 = vpop.f32.mrb[29].mxu0 }
 0x9f0   : > { %2219 = vrot.lane.b32.xlu0 %v2184_v45, %s3824_s14 }
 0x9f2   : > { %v3134_v44 = vpop.f32.mrb[30].mxu0 }
 0x9f3   : > { %2225 = vrot.lane.b32.xlu1 %v3134_v44, %s3824_s14  ;;  %v2194_v47 = vpop.f32.mrb[31].mxu0 }
 0x9f4   : > { %2223 = vrot.lane.b32.xlu0 %v2194_v47, %s3824_s14 }
 0x9f6   : > { %v3141_v24 = vpop.f32.mrb[32].mxu0 }
 0x9f7   : > { %2440 = vst.msk [vmem:[%s4783_s28 + $0x8] sm:$0xff] %vm311_vm0, %v3141_v24  ;;  %v2360_v46 = vpop.f32.mrb[33].mxu0 }
 0x9f8   : > { %2439 = vst.msk [vmem:[%s4783_s28] sm:$0xff] %vm311_vm0, %v2360_v46 }
 0x9fa   : > { %v3144_v16 = vpop.f32.mrb[34].mxu0 }
 0x9fb   : > { %2442 = vst.msk [vmem:[%s4783_s28 + $0x18] sm:$0xff] %vm311_vm0, %v3144_v16  ;;  %v2370_v18 = vpop.f32.mrb[35].mxu0 }
 0x9fc   : > { %2441 = vst.msk [vmem:[%s4783_s28 + $0x10] sm:$0xff] %vm311_vm0, %v2370_v18 }
 0x9fe   : > { %v3147_v40 = vpop.f32.mrb[36].mxu0 }
 0x9ff   : > { %2444 = vst.msk [vmem:[%s4783_s28 + $0x28] sm:$0xff] %vm311_vm0, %v3147_v40  ;;  %v2380_v59 = vpop.f32.mrb[37].mxu0 }
 0xa00   : > { %2443 = vst.msk [vmem:[%s4783_s28 + $0x20] sm:$0xff] %vm311_vm0, %v2380_v59 }
 0xa02   : > { %v3150_v61 = vpop.f32.mrb[38].mxu0 }
 0xa03   : > { %2446 = vst.msk [vmem:[%s4783_s28 + $0x38] sm:$0xff] %vm311_vm0, %v3150_v61  ;;  %v2390_v51 = vpop.f32.mrb[39].mxu0 }
 0xa04   : > { %2445 = vst.msk [vmem:[%s4783_s28 + $0x30] sm:$0xff] %vm311_vm0, %v2390_v51 }
 0xa59   : > { %v2214_v49 = vpop.permute.xlu1 %2213 }
 0xa5a   : > { %v2212_v62 = vpop.permute.xlu0 %2211  ;;  %v2236_v42 = vsel %vm529_vm1, %v4653_v54, %v2214_v49 }
 0xa5b   : > { %v2235_v2 = vsel %vm529_vm1, %v4655_v21, %v2212_v62 }
 0xa5c   : > { %3151 = vmatprep.mubr.msk.f32.mxu0 %vm2245_vm4, %v2235_v2 }
 0xa5d   : > { %3152 = vmatmul.mubr.msk.f32.gmra.mrb[40].mxu0 %vm2245_vm4, %v2236_v42  ;;  %v2218_v38 = vpop.permute.xlu1 %2217 }
 0xa5e   : > { %v2216_v33 = vpop.permute.xlu0 %2215  ;;  %v2238_v7 = vsel %vm529_vm1, %v4657_v27, %v2218_v38 }
 0xa5f   : > { %v2237_v31 = vsel %vm529_vm1, %v4659_v23, %v2216_v33 }
 0xa60   : > { %3154 = vmatprep.mubr.msk.f32.mxu0 %vm2245_vm4, %v2237_v31 }
 0xa61   : > { %3155 = vmatmul.mubr.msk.f32.gmra.mrb[42].mxu0 %vm2245_vm4, %v2238_v7  ;;  %v2222_v21 = vpop.permute.xlu1 %2221 }
 0xa62   : > { %v2220_v54 = vpop.permute.xlu0 %2219  ;;  %v2240_v63 = vsel %vm529_vm1, %v4661_v28, %v2222_v21 }
 0xa63   : > { %v2239_v20 = vsel %vm529_vm1, %v4663_v29, %v2220_v54 }
 0xa64   : > { %3157 = vmatprep.mubr.msk.f32.mxu0 %vm2245_vm4, %v2239_v20 }
 0xa65   : > { %3158 = vmatmul.mubr.msk.f32.gmra.mrb[44].mxu0 %vm2245_vm4, %v2240_v63  ;;  %v2226_v27 = vpop.permute.xlu1 %2225 }
 0xa66   : > { %v2224_v23 = vpop.permute.xlu0 %2223  ;;  %v2242_v41 = vsel %vm529_vm1, %v4665_v1, %v2226_v27 }
 0xa67   : > { %v2241_v17 = vsel %vm529_vm1, %v4667_v36, %v2224_v23 }
 0xa68   : > { %3160 = vmatprep.mubr.msk.f32.mxu0 %vm2245_vm4, %v2241_v17 }
 0xa69   : > { %3161 = vmatmul.mubr.msk.f32.gmra.mrb[46].mxu0 %vm2245_vm4, %v2242_v41 }
 0xb30   : > { %v3153_v28 = vpop.f32.mrb[40].mxu0 }
 0xb31   : > { %2448 = vst.msk [vmem:[%s4783_s28 + $0x48] sm:$0xff] %vm311_vm0, %v3153_v28  ;;  %v2400_v29 = vpop.f32.mrb[41].mxu0 }
 0xb32   : > { %2447 = vst.msk [vmem:[%s4783_s28 + $0x40] sm:$0xff] %vm311_vm0, %v2400_v29 }
 0xb34   : > { %v3156_v32 = vpop.f32.mrb[42].mxu0 }
 0xb35   : > { %2450 = vst.msk [vmem:[%s4783_s28 + $0x58] sm:$0xff] %vm311_vm0, %v3156_v32  ;;  %v2410_v10 = vpop.f32.mrb[43].mxu0 }
 0xb36   : > { %2449 = vst.msk [vmem:[%s4783_s28 + $0x50] sm:$0xff] %vm311_vm0, %v2410_v10 }
 0xb38   : > { %v3159_v36 = vpop.f32.mrb[44].mxu0 }
 0xb39   : > { %2452 = vst.msk [vmem:[%s4783_s28 + $0x68] sm:$0xff] %vm311_vm0, %v3159_v36  ;;  %v2420_v1 = vpop.f32.mrb[45].mxu0 }
 0xb3a   : > { %2451 = vst.msk [vmem:[%s4783_s28 + $0x60] sm:$0xff] %vm311_vm0, %v2420_v1 }
 0xb3c   : > { %v3162_v8 = vpop.f32.mrb[46].mxu0 }
 0xb3d   : > { %2454 = vst.msk [vmem:[%s4783_s28 + $0x78] sm:$0xff] %vm311_vm0, %v3162_v8  ;;  %v2430_v14 = vpop.f32.mrb[47].mxu0 }
 0xb3e   : > { %2453 = vst.msk [vmem:[%s4783_s28 + $0x70] sm:$0xff] %vm311_vm0, %v2430_v14 }
 0xb3f PF: > { %p15_p10 = scmp.ge.s32.totalorder %s3871_s19, 4   ;;  %s4872_s15 = smov %s3804_s16 }
 0xb40   : > { %s4873_s16 = smov %s3808_s17  ;;  %s4874_s17 = smov %s3880_s22 }
 0xb41   : > { %s4875_s18 = smov %s3871_s19  ;;  %17 = sbr.rel (!%p15_p10) target bundleno = 4 (0x4), region = 95 }
 0xb48   :  { %2476 = vsyncpa [#allocation3], 1 }
 0xb49   :  { %2478 = vsyncpa [#allocation3 + $0x1], 1 }
 0xb4a   :  { %2479 = vsyncpa [#allocation5], 1 }
 0xb4b   :  { %2481 = vsyncpa [#allocation5 + $0x1], 1 }

</bundles_post_ra>
